<compile_context>
chip_gen: v7x
topology: tpu7x:2x2x1
jax: 0.10.0
libtpu: 0.0.40
codegen_flags: <defaults>
</compile_context>

<pallas_src>
import numpy as np
import jax
import jax.numpy as jnp
from jax.experimental import pallas as pl
from jax.experimental.pallas import tpu as pltpu


def _conv3x3_kernel(x_ref, top_ref, bot_ref, w_ref, b_ref, o_ref,
                    xp_ref, patch_ref):
    """One (batch, H-row tile, Cout tile) grid step.

    x_ref:     (1, TH, W, Cin)    unpadded row tile
    top_ref:   (1, 1,  W, Cin)    row just above the tile (index_map clamped)
    bot_ref:   (1, 1,  W, Cin)    row just below the tile (index_map clamped)
    w_ref:     (9*Cin, TCout)     im2col weights (compute dtype)
    b_ref:     (1, TCout)         bias (f32, zero-padded)
    o_ref:     (1, TH, W, TCout)  output tile (TCout is a multiple of 128)
    xp_ref:    (TH+2, W+2, Cin)   VMEM scratch: zero-padded input window
    patch_ref: (TH*W, 9*Cin)      VMEM scratch: im2col patch
    """
    TH = x_ref.shape[1]
    W = x_ref.shape[2]
    Cin = x_ref.shape[3]
    TCout = o_ref.shape[3]
    cdt = xp_ref.dtype

    r = pl.program_id(1)
    n_row_tiles = pl.num_programs(1)

    # ---- ZeroPad2d(1) folded into the kernel: build the padded window in
    # VMEM scratch.  Halo rows come from the clamped 1-row neighbour blocks;
    # at the image border pl.when leaves them at zero.
    xp_ref[...] = jnp.zeros_like(xp_ref)
    xp_ref[1:TH + 1, 1:W + 1, :] = x_ref[0].astype(cdt)

    @pl.when(r > 0)
    def _():
        xp_ref[0:1, 1:W + 1, :] = top_ref[0].astype(cdt)

    @pl.when(r < n_row_tiles - 1)
    def _():
        xp_ref[TH + 1:TH + 2, 1:W + 1, :] = bot_ref[0].astype(cdt)

    # ---- im2col: build the (TH*W, 9*Cin) patch from 3 W-shifted slabs
    # (3 W-offset relayouts instead of 9 per-tap slice+reshape relayouts).
    # TODO(synk): for Cin >= 128 switch back to 9 per-tap K=Cin MXU matmuls
    # (the MXU contraction dim is already well fed there).
    xpv = xp_ref[...]
    for kw in range(3):
        slab = xpv[:, kw:kw + W, :]                       # (TH+2, W, Cin)
        for kh in range(3):
            k = kh * 3 + kw
            patch_ref[:, k * Cin:(k + 1) * Cin] = (
                slab[kh:kh + TH].reshape(TH * W, Cin))

    # ---- single lane-dense MXU matmul (K = 9*Cin), f32 accumulation.
    acc = jnp.dot(patch_ref[...], w_ref[...],
                  preferred_element_type=jnp.float32)
    acc = acc + b_ref[...]                                # (1, TCout) broadcast
    o_ref[...] = acc.reshape(1, TH, W, TCout).astype(o_ref.dtype)


def _choose_row_tile(H, W, Cin, tcout, in_itemsize, out_itemsize, cdt_itemsize,
                     budget_bytes=24 * 1024 * 1024):
    """Largest divisor of H whose per-step VMEM footprint (double-buffered
    in/out blocks + scratch + weights) fits the budget.  Budget is sized for
    the smallest-VMEM generation (v7x: 64 MiB physical / 32 MiB scoped)."""
    best = 1
    for th in range(1, H + 1):
        if H % th:
            continue
        need = 2 * th * W * Cin * in_itemsize            # input block (x2 bufs)
        need += 2 * 2 * W * Cin * in_itemsize            # 2 halo-row blocks (x2)
        need += 2 * th * W * tcout * out_itemsize        # output block (x2 bufs)
        need += (th + 2) * (W + 2) * Cin * cdt_itemsize  # padded window scratch
        need += th * W * 9 * Cin * cdt_itemsize          # im2col patch scratch
        need += 9 * Cin * tcout * cdt_itemsize + 4 * tcout   # weights + bias
        if need <= budget_bytes:
            best = th
    return best


def conv3x3_nhwc(x_nhwc, weight, bias, *, row_tile=None, cout_tile=128,
                 compute_dtype=jnp.bfloat16):
    """ZeroPad2d(1) + Conv2d(k=3, s=1, bias) on NHWC input.

    Channels-last entry point: use directly in an NHWC graph to avoid the
    NCHW<->NHWC transposes done by conv3x3().
    weight: (Cout, Cin, 3, 3) PyTorch layout; bias: (Cout,).
    """
    N, H, W, Cin = x_nhwc.shape
    Cout, Cin_w, KH, KW = weight.shape
    assert (Cin_w, KH, KW) == (Cin, 3, 3), (weight.shape, Cin)

    LANE = 128
    Cout_p = pl.cdiv(Cout, LANE) * LANE          # lane-dense output channels
    TCout = min(int(cout_tile), Cout_p)
    if Cout_p % TCout:
        TCout = LANE
    n_cout_tiles = Cout_p // TCout

    # Weights -> im2col layout (kh, kw, cin) x cout, zero-padded along Cout so
    # the kernel's innermost (lane) output dim is a multiple of 128.  Bias is
    # zero-padded identically (padded channels are sliced off below).
    w_im2col = jnp.transpose(weight, (2, 3, 1, 0)).reshape(9 * Cin, Cout)
    w_im2col = jnp.pad(w_im2col, ((0, 0), (0, Cout_p - Cout))).astype(compute_dtype)
    b_pad = jnp.pad(bias.astype(jnp.float32), (0, Cout_p - Cout)).reshape(1, Cout_p)

    cdt_itemsize = np.dtype(compute_dtype).itemsize
    if row_tile is None:
        row_tile = _choose_row_tile(H, W, Cin, TCout,
                                    x_nhwc.dtype.itemsize,
                                    x_nhwc.dtype.itemsize, cdt_itemsize)
    TH = int(row_tile)
    if H % TH:
        raise ValueError(f"row_tile={TH} must divide H={H}")
    n_row_tiles = H // TH

    out_padded = pl.pallas_call(
        _conv3x3_kernel,
        out_shape=jax.ShapeDtypeStruct((N, H, W, Cout_p), x_nhwc.dtype),
        grid_spec=pltpu.PrefetchScalarGridSpec(
            num_scalar_prefetch=0,
            grid=(N, n_row_tiles, n_cout_tiles),
            in_specs=[
                # current row tile (unpadded; padding happens in-kernel)
                pl.BlockSpec((1, TH, W, Cin), lambda b, r, c: (b, r, 0, 0)),
                # single row above / below the tile; index clamped at borders
                pl.BlockSpec((1, 1, W, Cin),
                             lambda b, r, c: (b, jnp.maximum(r * TH - 1, 0), 0, 0)),
                pl.BlockSpec((1, 1, W, Cin),
                             lambda b, r, c: (b, jnp.minimum(r * TH + TH, H - 1), 0, 0)),
                # weights / bias: block index constant along (batch, row) axes
                # -> fetched once per Cout block, stays VMEM-resident.
                pl.BlockSpec((9 * Cin, TCout), lambda b, r, c: (0, c)),
                pl.BlockSpec((1, TCout), lambda b, r, c: (0, c)),
            ],
            out_specs=pl.BlockSpec((1, TH, W, TCout),
                                   lambda b, r, c: (b, r, 0, c)),
            scratch_shapes=[
                pltpu.VMEM((TH + 2, W + 2, Cin), compute_dtype),  # padded window
                pltpu.VMEM((TH * W, 9 * Cin), compute_dtype),     # im2col patch
            ],
        ),
        compiler_params=pltpu.CompilerParams(
            # All grid axes are independent -> megacore may shard any of them.
            dimension_semantics=("parallel", "parallel", "parallel"),
            # Above v5e's 16 MiB scoped default; within every generation's
            # physical VMEM (tiles are sized against ~24 MiB anyway).
            vmem_limit_bytes=32 * 1024 * 1024,
        ),
    )(x_nhwc, x_nhwc, x_nhwc, w_im2col, b_pad)

    return out_padded[..., :Cout]    # drop the lane-padding channels


def conv3x3(x_nchw, weight, bias, *, row_tile=None, cout_tile=128,
            compute_dtype=jnp.bfloat16):
    """PyTorch-facing Conv3x3.forward equivalent (NCHW in / NCHW out).

    The two transposes here are the only wrapper-side HBM passes left; graphs
    that already run channels-last should call conv3x3_nhwc directly.
    """
    out_nhwc = conv3x3_nhwc(jnp.transpose(x_nchw, (0, 2, 3, 1)), weight, bias,
                            row_tile=row_tile, cout_tile=cout_tile,
                            compute_dtype=compute_dtype)
    return jnp.transpose(out_nhwc, (0, 3, 1, 2))


def conv3x3_reference(x_nchw, weight, bias):
    """Pure-JAX reference (lax conv) for correctness check."""
    out = jax.lax.conv_general_dilated(
        x_nchw, weight,
        window_strides=(1, 1),
        padding=((1, 1), (1, 1)),
        dimension_numbers=("NCHW", "OIHW", "NCHW"),
    )
    return out + bias.reshape(1, -1, 1, 1)


if __name__ == "__main__":
    key = jax.random.PRNGKey(0)
    k_x, k_w, k_b = jax.random.split(key, 3)

    N, Cin, H, W = 2, 4, 16, 16
    Cout = 8

    x = jax.random.normal(k_x, (N, Cin, H, W), dtype=jnp.float32)
    fan_in = Cin * 3 * 3
    bound = 1.0 / (fan_in ** 0.5)
    weight = jax.random.uniform(k_w, (Cout, Cin, 3, 3),
                                minval=-bound, maxval=bound, dtype=jnp.float32)
    bias = jax.random.uniform(k_b, (Cout,),
                              minval=-bound, maxval=bound, dtype=jnp.float32)

    ref = jax.block_until_ready(conv3x3_reference(x, weight, bias))

    # Exact check (f32 MXU path), forcing 2 row tiles so the halo path runs.
    out_f32 = jax.block_until_ready(
        conv3x3(x, weight, bias, row_tile=8, compute_dtype=jnp.float32))
    assert out_f32.shape == (N, Cout, H, W), out_f32.shape
    assert jnp.allclose(out_f32, ref, atol=1e-4, rtol=1e-4), (
        float(jnp.max(jnp.abs(out_f32 - ref))))

    # Default path: bf16 MXU inputs with f32 accumulation (tolerance loosened
    # accordingly, as anticipated in the perf review).
    out = jax.block_until_ready(conv3x3(x, weight, bias))
    assert out.shape == (N, Cout, H, W), out.shape
    err = float(jnp.max(jnp.abs(out - ref)))
    assert err < 5e-2, err

    print("KERNEL_OK")
</pallas_src>

<mosaic_0001>
module attributes {stable_mosaic.version = 11 : i64} {
  func.func @_conv3x3_kernel(%arg0: i32, %arg1: i32, %arg2: i32, %arg3: memref<1x8x16x4xf32, #tpu.memory_space<vmem>>, %arg4: memref<1x1x16x4xf32, #tpu.memory_space<vmem>>, %arg5: memref<1x1x16x4xf32, #tpu.memory_space<vmem>>, %arg6: memref<36x128xf32, #tpu.memory_space<vmem>>, %arg7: memref<1x128xf32, #tpu.memory_space<vmem>>, %arg8: memref<1x8x16x128xf32, #tpu.memory_space<vmem>>, %arg9: memref<10x18x4xf32, #tpu.memory_space<vmem>>, %arg10: memref<128x36xf32, #tpu.memory_space<vmem>>) attributes {dimension_semantics = [#tpu.dimension_semantics<parallel>, #tpu.dimension_semantics<parallel>, #tpu.dimension_semantics<parallel>], iteration_bounds = array<i64: 2, 2, 1>, scalar_prefetch = 0 : i64, scratch_operands = 2 : i64, tpu.core_type = #tpu.core_type<tc>, window_params = [{transform_indices = @transform_0, window_bounds = array<i64: 1, 8, 16, 4>}, {transform_indices = @transform_1, window_bounds = array<i64: 1, 1, 16, 4>}, {transform_indices = @transform_2, window_bounds = array<i64: 1, 1, 16, 4>}, {transform_indices = @transform_3, window_bounds = array<i64: 36, 128>}, {transform_indices = @transform_4, window_bounds = array<i64: 1, 128>}, {transform_indices = @transform_5, window_bounds = array<i64: 1, 8, 16, 128>}]} {
    %cst = arith.constant 0.000000e+00 : f32
    %0 = vector.broadcast %cst : f32 to vector<10x18x4xf32>
    %c0 = arith.constant 0 : index
    %c0_0 = arith.constant 0 : index
    %c0_1 = arith.constant 0 : index
    %1 = vector.load %arg9[%c0, %c0_0, %c0_1] : memref<10x18x4xf32, #tpu.memory_space<vmem>>, vector<10x18x4xf32>
    tpu.vector_store %arg9[%c0, %c0_0, %c0_1], %0 {strides = array<i32>} : memref<10x18x4xf32, #tpu.memory_space<vmem>>, vector<10x18x4xf32>,
    %c0_2 = arith.constant 0 : index
    %c0_3 = arith.constant 0 : index
    %c0_4 = arith.constant 0 : index
    %c0_5 = arith.constant 0 : index
    %2 = vector.load %arg3[%c0_2, %c0_3, %c0_4, %c0_5] : memref<1x8x16x4xf32, #tpu.memory_space<vmem>>, vector<1x8x16x4xf32>
    %3 = vector.shape_cast %2 : vector<1x8x16x4xf32> to vector<8x16x4xf32>
    %c1 = arith.constant 1 : index
    %c1_6 = arith.constant 1 : index
    %c0_7 = arith.constant 0 : index
    %4 = vector.load %arg9[%c1, %c1_6, %c0_7] : memref<10x18x4xf32, #tpu.memory_space<vmem>>, vector<8x16x4xf32>
    tpu.vector_store %arg9[%c1, %c1_6, %c0_7], %3 {strides = array<i32>} : memref<10x18x4xf32, #tpu.memory_space<vmem>>, vector<8x16x4xf32>,
    %c0_i32 = arith.constant 0 : i32
    %5 = arith.cmpi sgt, %arg1, %c0_i32 : i32
    %6 = arith.extui %5 : i1 to i32
    %c0_i32_8 = arith.constant 0 : i32
    %7 = arith.cmpi ne, %6, %c0_i32_8 : i32
    scf.if %7 {
      %c0_34 = arith.constant 0 : index
      %c0_35 = arith.constant 0 : index
      %c0_36 = arith.constant 0 : index
      %c0_37 = arith.constant 0 : index
      %50 = vector.load %arg4[%c0_34, %c0_35, %c0_36, %c0_37] : memref<1x1x16x4xf32, #tpu.memory_space<vmem>>, vector<1x1x16x4xf32>
      %51 = vector.shape_cast %50 : vector<1x1x16x4xf32> to vector<1x16x4xf32>
      %c0_38 = arith.constant 0 : index
      %c1_39 = arith.constant 1 : index
      %c0_40 = arith.constant 0 : index
      %52 = vector.load %arg9[%c0_38, %c1_39, %c0_40] : memref<10x18x4xf32, #tpu.memory_space<vmem>>, vector<1x16x4xf32>
      tpu.vector_store %arg9[%c0_38, %c1_39, %c0_40], %51 {strides = array<i32>} : memref<10x18x4xf32, #tpu.memory_space<vmem>>, vector<1x16x4xf32>,
    } else {
    }
    %c1_i32 = arith.constant 1 : i32
    %8 = arith.cmpi slt, %arg1, %c1_i32 : i32
    %9 = arith.extui %8 : i1 to i32
    %c0_i32_9 = arith.constant 0 : i32
    %10 = arith.cmpi ne, %9, %c0_i32_9 : i32
    scf.if %10 {
      %c0_34 = arith.constant 0 : index
      %c0_35 = arith.constant 0 : index
      %c0_36 = arith.constant 0 : index
      %c0_37 = arith.constant 0 : index
      %50 = vector.load %arg5[%c0_34, %c0_35, %c0_36, %c0_37] : memref<1x1x16x4xf32, #tpu.memory_space<vmem>>, vector<1x1x16x4xf32>
      %51 = vector.shape_cast %50 : vector<1x1x16x4xf32> to vector<1x16x4xf32>
      %c9 = arith.constant 9 : index
      %c1_38 = arith.constant 1 : index
      %c0_39 = arith.constant 0 : index
      %52 = vector.load %arg9[%c9, %c1_38, %c0_39] : memref<10x18x4xf32, #tpu.memory_space<vmem>>, vector<1x16x4xf32>
      tpu.vector_store %arg9[%c9, %c1_38, %c0_39], %51 {strides = array<i32>} : memref<10x18x4xf32, #tpu.memory_space<vmem>>, vector<1x16x4xf32>,
    } else {
    }
    %c0_10 = arith.constant 0 : index
    %c0_11 = arith.constant 0 : index
    %c0_12 = arith.constant 0 : index
    %11 = vector.load %arg9[%c0_10, %c0_11, %c0_12] : memref<10x18x4xf32, #tpu.memory_space<vmem>>, vector<10x18x4xf32>
    %12 = vector.extract_strided_slice %11 {offsets = [0, 0, 0], sizes = [10, 16, 4], strides = [1, 1, 1]} : vector<10x18x4xf32> to vector<10x16x4xf32>
    %13 = vector.extract_strided_slice %12 {offsets = [0, 0, 0], sizes = [8, 16, 4], strides = [1, 1, 1]} : vector<10x16x4xf32> to vector<8x16x4xf32>
    %14 = vector.shape_cast %13 : vector<8x16x4xf32> to vector<128x4xf32>
    %c0_13 = arith.constant 0 : index
    %c0_14 = arith.constant 0 : index
    %15 = vector.load %arg10[%c0_13, %c0_14] : memref<128x36xf32, #tpu.memory_space<vmem>>, vector<128x4xf32>
    tpu.vector_store %arg10[%c0_13, %c0_14], %14 {strides = array<i32>} : memref<128x36xf32, #tpu.memory_space<vmem>>, vector<128x4xf32>,
    %16 = vector.extract_strided_slice %12 {offsets = [1, 0, 0], sizes = [8, 16, 4], strides = [1, 1, 1]} : vector<10x16x4xf32> to vector<8x16x4xf32>
    %17 = vector.shape_cast %16 : vector<8x16x4xf32> to vector<128x4xf32>
    %c0_15 = arith.constant 0 : index
    %c12 = arith.constant 12 : index
    %18 = vector.load %arg10[%c0_15, %c12] : memref<128x36xf32, #tpu.memory_space<vmem>>, vector<128x4xf32>
    tpu.vector_store %arg10[%c0_15, %c12], %17 {strides = array<i32>} : memref<128x36xf32, #tpu.memory_space<vmem>>, vector<128x4xf32>,
    %19 = vector.extract_strided_slice %12 {offsets = [2, 0, 0], sizes = [8, 16, 4], strides = [1, 1, 1]} : vector<10x16x4xf32> to vector<8x16x4xf32>
    %20 = vector.shape_cast %19 : vector<8x16x4xf32> to vector<128x4xf32>
    %c0_16 = arith.constant 0 : index
    %c24 = arith.constant 24 : index
    %21 = vector.load %arg10[%c0_16, %c24] : memref<128x36xf32, #tpu.memory_space<vmem>>, vector<128x4xf32>
    tpu.vector_store %arg10[%c0_16, %c24], %20 {strides = array<i32>} : memref<128x36xf32, #tpu.memory_space<vmem>>, vector<128x4xf32>,
    %22 = vector.extract_strided_slice %11 {offsets = [0, 1, 0], sizes = [10, 16, 4], strides = [1, 1, 1]} : vector<10x18x4xf32> to vector<10x16x4xf32>
    %23 = vector.extract_strided_slice %22 {offsets = [0, 0, 0], sizes = [8, 16, 4], strides = [1, 1, 1]} : vector<10x16x4xf32> to vector<8x16x4xf32>
    %24 = vector.shape_cast %23 : vector<8x16x4xf32> to vector<128x4xf32>
    %c0_17 = arith.constant 0 : index
    %c4 = arith.constant 4 : index
    %25 = vector.load %arg10[%c0_17, %c4] : memref<128x36xf32, #tpu.memory_space<vmem>>, vector<128x4xf32>
    tpu.vector_store %arg10[%c0_17, %c4], %24 {strides = array<i32>} : memref<128x36xf32, #tpu.memory_space<vmem>>, vector<128x4xf32>,
    %26 = vector.extract_strided_slice %22 {offsets = [1, 0, 0], sizes = [8, 16, 4], strides = [1, 1, 1]} : vector<10x16x4xf32> to vector<8x16x4xf32>
    %27 = vector.shape_cast %26 : vector<8x16x4xf32> to vector<128x4xf32>
    %c0_18 = arith.constant 0 : index
    %c16 = arith.constant 16 : index
    %28 = vector.load %arg10[%c0_18, %c16] : memref<128x36xf32, #tpu.memory_space<vmem>>, vector<128x4xf32>
    tpu.vector_store %arg10[%c0_18, %c16], %27 {strides = array<i32>} : memref<128x36xf32, #tpu.memory_space<vmem>>, vector<128x4xf32>,
    %29 = vector.extract_strided_slice %22 {offsets = [2, 0, 0], sizes = [8, 16, 4], strides = [1, 1, 1]} : vector<10x16x4xf32> to vector<8x16x4xf32>
    %30 = vector.shape_cast %29 : vector<8x16x4xf32> to vector<128x4xf32>
    %c0_19 = arith.constant 0 : index
    %c28 = arith.constant 28 : index
    %31 = vector.load %arg10[%c0_19, %c28] : memref<128x36xf32, #tpu.memory_space<vmem>>, vector<128x4xf32>
    tpu.vector_store %arg10[%c0_19, %c28], %30 {strides = array<i32>} : memref<128x36xf32, #tpu.memory_space<vmem>>, vector<128x4xf32>,
    %32 = vector.extract_strided_slice %11 {offsets = [0, 2, 0], sizes = [10, 16, 4], strides = [1, 1, 1]} : vector<10x18x4xf32> to vector<10x16x4xf32>
    %33 = vector.extract_strided_slice %32 {offsets = [0, 0, 0], sizes = [8, 16, 4], strides = [1, 1, 1]} : vector<10x16x4xf32> to vector<8x16x4xf32>
    %34 = vector.shape_cast %33 : vector<8x16x4xf32> to vector<128x4xf32>
    %c0_20 = arith.constant 0 : index
    %c8 = arith.constant 8 : index
    %35 = vector.load %arg10[%c0_20, %c8] : memref<128x36xf32, #tpu.memory_space<vmem>>, vector<128x4xf32>
    tpu.vector_store %arg10[%c0_20, %c8], %34 {strides = array<i32>} : memref<128x36xf32, #tpu.memory_space<vmem>>, vector<128x4xf32>,
    %36 = vector.extract_strided_slice %32 {offsets = [1, 0, 0], sizes = [8, 16, 4], strides = [1, 1, 1]} : vector<10x16x4xf32> to vector<8x16x4xf32>
    %37 = vector.shape_cast %36 : vector<8x16x4xf32> to vector<128x4xf32>
    %c0_21 = arith.constant 0 : index
    %c20 = arith.constant 20 : index
    %38 = vector.load %arg10[%c0_21, %c20] : memref<128x36xf32, #tpu.memory_space<vmem>>, vector<128x4xf32>
    tpu.vector_store %arg10[%c0_21, %c20], %37 {strides = array<i32>} : memref<128x36xf32, #tpu.memory_space<vmem>>, vector<128x4xf32>,
    %39 = vector.extract_strided_slice %32 {offsets = [2, 0, 0], sizes = [8, 16, 4], strides = [1, 1, 1]} : vector<10x16x4xf32> to vector<8x16x4xf32>
    %40 = vector.shape_cast %39 : vector<8x16x4xf32> to vector<128x4xf32>
    %c0_22 = arith.constant 0 : index
    %c32 = arith.constant 32 : index
    %41 = vector.load %arg10[%c0_22, %c32] : memref<128x36xf32, #tpu.memory_space<vmem>>, vector<128x4xf32>
    tpu.vector_store %arg10[%c0_22, %c32], %40 {strides = array<i32>} : memref<128x36xf32, #tpu.memory_space<vmem>>, vector<128x4xf32>,
    %c0_23 = arith.constant 0 : index
    %c0_24 = arith.constant 0 : index
    %42 = vector.load %arg10[%c0_23, %c0_24] : memref<128x36xf32, #tpu.memory_space<vmem>>, vector<128x36xf32>
    %c0_25 = arith.constant 0 : index
    %c0_26 = arith.constant 0 : index
    %43 = vector.load %arg6[%c0_25, %c0_26] : memref<36x128xf32, #tpu.memory_space<vmem>>, vector<36x128xf32>
    %cst_27 = arith.constant dense<0.000000e+00> : vector<128x128xf32>
    %44 = tpu.matmul %42, %43, %cst_27 {dimension_numbers = #tpu.dot_dimension_numbers<[1], [0], [0], [1], [0, 0, 1, 1], [], []>} : vector<128x36xf32>, vector<36x128xf32>, vector<128x128xf32> -> vector<128x128xf32>
    %c0_28 = arith.constant 0 : index
    %c0_29 = arith.constant 0 : index
    %45 = vector.load %arg7[%c0_28, %c0_29] : memref<1x128xf32, #tpu.memory_space<vmem>>, vector<1x128xf32>
    %46 = vector.broadcast %45 : vector<1x128xf32> to vector<128x128xf32>
    %47 = arith.addf %44, %46 : vector<128x128xf32>
    %48 = vector.shape_cast %47 : vector<128x128xf32> to vector<1x8x16x128xf32>
    %c0_30 = arith.constant 0 : index
    %c0_31 = arith.constant 0 : index
    %c0_32 = arith.constant 0 : index
    %c0_33 = arith.constant 0 : index
    %49 = vector.load %arg8[%c0_30, %c0_31, %c0_32, %c0_33] : memref<1x8x16x128xf32, #tpu.memory_space<vmem>>, vector<1x8x16x128xf32>
    tpu.vector_store %arg8[%c0_30, %c0_31, %c0_32, %c0_33], %48 {strides = array<i32>} : memref<1x8x16x128xf32, #tpu.memory_space<vmem>>, vector<1x8x16x128xf32>,
    return
  }
  func.func @transform_0(%arg0: i32, %arg1: i32, %arg2: i32) -> (i32, i32, i32, i32) {
    %c0_i32 = arith.constant 0 : i32
    %c0_i32_0 = arith.constant 0 : i32
    %c0_i32_1 = arith.constant 0 : i32
    return %arg0, %arg1, %c0_i32, %c0_i32_0 : i32, i32, i32, i32
  }
  func.func @transform_1(%arg0: i32, %arg1: i32, %arg2: i32) -> (i32, i32, i32, i32) {
    %c8_i32 = arith.constant 8 : i32
    %0 = arith.muli %arg1, %c8_i32 : i32
    %c1_i32 = arith.constant 1 : i32
    %1 = arith.subi %0, %c1_i32 : i32
    %c0_i32 = arith.constant 0 : i32
    %2 = arith.maxsi %1, %c0_i32 : i32
    %c0_i32_0 = arith.constant 0 : i32
    %c0_i32_1 = arith.constant 0 : i32
    %c0_i32_2 = arith.constant 0 : i32
    return %arg0, %2, %c0_i32_0, %c0_i32_1 : i32, i32, i32, i32
  }
  func.func @transform_2(%arg0: i32, %arg1: i32, %arg2: i32) -> (i32, i32, i32, i32) {
    %c8_i32 = arith.constant 8 : i32
    %0 = arith.muli %arg1, %c8_i32 : i32
    %c8_i32_0 = arith.constant 8 : i32
    %1 = arith.addi %0, %c8_i32_0 : i32
    %c15_i32 = arith.constant 15 : i32
    %2 = arith.minsi %1, %c15_i32 : i32
    %c0_i32 = arith.constant 0 : i32
    %c0_i32_1 = arith.constant 0 : i32
    %c0_i32_2 = arith.constant 0 : i32
    return %arg0, %2, %c0_i32, %c0_i32_1 : i32, i32, i32, i32
  }
  func.func @transform_3(%arg0: i32, %arg1: i32, %arg2: i32) -> (i32, i32) {
    %c0_i32 = arith.constant 0 : i32
    %c0_i32_0 = arith.constant 0 : i32
    return %c0_i32, %arg2 : i32, i32
  }
  func.func @transform_4(%arg0: i32, %arg1: i32, %arg2: i32) -> (i32, i32) {
    %c0_i32 = arith.constant 0 : i32
    %c0_i32_0 = arith.constant 0 : i32
    return %c0_i32, %arg2 : i32, i32
  }
  func.func @transform_5(%arg0: i32, %arg1: i32, %arg2: i32) -> (i32, i32, i32, i32) {
    %c0_i32 = arith.constant 0 : i32
    %c0_i32_0 = arith.constant 0 : i32
    return %arg0, %arg1, %c0_i32, %arg2 : i32, i32, i32, i32
  }
}

</mosaic_0001>

<bundles_post_ra>
// kernel: tpu_custom_call.1
= control target key start
LH: loop header
LB: loop body
LE: loop exit
PB: predicated region body
PF: predicated region fallthrough
CT: control target
= control target key end

     0   :  { %s2894_s0 = inlined_call_operand.vmem [shape: f32[2,16,16,4], index: 0, kind: input, shape index: {}]   ;;  %s2895_s1 = inlined_call_operand.vmem [shape: f32[2,16,16,4], index: 1, kind: input, shape index: {}]   ;;  %s2896_s2 = inlined_call_operand.vmem [shape: f32[2,16,16,4], index: 2, kind: input, shape index: {}]   ;;  %s2897_s3 = inlined_call_operand.vmem [shape: f32[36,128], index: 3, kind: input, shape index: {}]   ;;  %s2898_s4 = inlined_call_operand.vmem [shape: f32[1,128], index: 4, kind: input, shape index: {}]   ;;  %s2899_s5 = inlined_call_operand.hbm [shape: f32[2,16,16,128], index: 5, kind: output, shape index: {}]  }
   0x1   :  { %2903 = sst [smem:[#allocation9_spill]] %s2894_s0 }
   0x2   :  { %10 = vsyncpa [#allocation5], 0 }
   0x3   :  { %12 = vsyncpa [#allocation5 + $0x1], 0  ;;  %s1971_s18 = smov 0   ;;  %s1973_s19 = smov 0  }
   0x4   :  { %s1975_s20 = smov 0   ;;  %s1977_s21 = smov 0  }
   0x5   :  { %s1979_s22 = smov 0   ;;  %s1981_s23 = smov 0  }
   0x6   :  { %s1983_s24 = smov 0   ;;  %s1985_s25 = smov 0  }
   0x7 LB: > { %s1619_s26 = sadd.s32 4294967295, %s1928_s25   ;;  %s1620_s27 = sadd.s32 4294967294, %s1928_s25   ;;  %s1928_s25 = sphi %s1985_s25, %s18_s25   ;;  %s1924_s24 = sphi %s1983_s24, %s2919_s24   ;;  %s1920_s23 = sphi %s1981_s23, %s2918_s23   ;;  %s1916_s22 = sphi %s1979_s22, %s2917_s22   ;;  %s1912_s21 = sphi %s1977_s21, %s2916_s21   ;;  %s1908_s20 = sphi %s1975_s20, %s2915_s20   ;;  %s1904_s19 = sphi %s1973_s19, %s2914_s19   ;;  %s1900_s18 = sphi %s1971_s18, %s2913_s18  }
   0x8   : > { %s33_s28 = sadd.s32 1, %s1920_s23  ;;  %s37_s29 = sadd.s32 1, %s1924_s24 }
   0x9   : > { %p35_p0 = scmp.ge.s32.totalorder %s33_s28, 2  ;;  %p210_p1 = scmp.ne.s32.totalorder %s1908_s20, %s1904_s19 }
   0xa   : > { %p211_p2 = scmp.eq.s32.totalorder %s1619_s26, 3  ;;  %p216_p5 = scmp.ne.s32.totalorder %s1904_s19, %s1900_s18 }
   0xb   : > { %s2921_s28 = smov (%p35_p0, %s33_s28), 0  ;;  %s2923_s29 = smov (!%p35_p0, %s37_s29), %s1924_s24 }
   0xc   : > { %2904 = sst [smem:[#allocation7_spill]] %s2921_s28  ;;  %s194_s30 = ssub.s32 %s1920_s23, %s2921_s28 }
   0xd   : > { %p2022_p3 = por %p211_p2, %p210_p1  ;;  %p39_p4 = scmp.ge.s32.totalorder %s2923_s29, 2 }
   0xe   : > { %p217_p6 = scmp.eq.s32.totalorder %s1620_s27, 3  ;;  %p1631_p7 = scmp.ge.s32.totalorder %s1928_s25, 1 }
   0xf   : > { %s2925_s29 = smov (%p39_p4, %s2923_s29), 0  ;;  %p302_p9 = scmp.lt.s32.totalorder %s1928_s25, 5 }
  0x10   : > { %2906 = sst [smem:[#allocation8_spill]] %s2925_s29  ;;  %p2031_p8 = por %p217_p6, %p216_p5 }
  0x11   : > { %s193_s8 = ssub.s32 %s1924_s24, %s2925_s29  ;;  %s200_s9 = sadd.s32 1, %s1908_s20 }
  0x12   : > { %s195_s10 = sor.u32 %s194_s30, %s193_s8  ;;  %p303_p10 = pnand %p1631_p7, %p302_p9 }
  0x13   : > { %p198_p11 = scmp.eq.s32.totalorder %s195_s10, 0  ;;  %vm421_vm0 = vcmask (!%p303_p10), 31744   ;;  %vm424_vm1 = vcmask (!%p303_p10), 25600   ;;  %s2902_s12 = sand.u32 (!%p303_p10), 1, %s1904_s19   ;;  %v1930_v0 = vmov (!%p303_p10), 0.0  }
  0x14   : > { %306 = sbr.rel (%p303_p10) target bundleno = 664 (0x298), region = 40  ;;  %s2044_s13 = sshll.u32 (!%p303_p10), %s1912_s21, 3  ;;  %426 = vst.msk [vmem:[#allocation2 + $0x18] sm:$0xff] (!%p303_p10), %vm421_vm0, %v1930_v0  ;;  %422 = vst.msk [vmem:[#allocation2] sm:$0xff] (!%p303_p10), %vm421_vm0, %v1930_v0 }
  0x15   : > { %s2040_s11 = scalar_select %p198_p11, %s1908_s20, %s200_s9  }
  0x16   : > { %423 = vst.msk [vmem:[#allocation2 + $0x8] sm:$0xff] (!%p303_p10), %vm421_vm0, %v1930_v0  ;;  %427 = vst.msk [vmem:[#allocation2 + $0x20] sm:$0xff] (!%p303_p10), %vm421_vm0, %v1930_v0  ;;  %s2078_s14 = sshll.u32 (!%p303_p10), %s2902_s12, 7  ;;  %p369_p12 = scmp.lt.s32.totalorder (!%p303_p10), %s1916_s22, 1 }
  0x17   : > { %429 = vst.msk [vmem:[#allocation2 + $0x30] sm:$0xff] (!%p303_p10), %vm421_vm0, %v1930_v0  ;;  %430 = vst.msk [vmem:[#allocation2 + $0x38] sm:$0xff] (!%p303_p10), %vm421_vm0, %v1930_v0  ;;  %p371_p13 = scmp.lt.s32.totalorder (!%p303_p10), %s2044_s13, 15  ;;  %s1638_s26 = sadd.s32 (!%p303_p10), 4294967295, %s2044_s13 }
  0x18   : > { %432 = vst.msk [vmem:[#allocation2 + $0x48] sm:$0xff] (!%p303_p10), %vm421_vm0, %v1930_v0  ;;  %433 = vst.msk [vmem:[#allocation2 + $0x50] sm:$0xff] (!%p303_p10), %vm421_vm0, %v1930_v0  ;;  %p381_p0 = scmp.gt.s32.totalorder (!%p303_p10), %s1638_s26, 0  ;;  %p1639_p1 = scmp.lt.s32.totalorder (!%p303_p10), %s1638_s26, 15 }
  0x19   : > { %435 = vst.msk [vmem:[#allocation2 + $0x60] sm:$0xff] (!%p303_p10), %vm421_vm0, %v1930_v0  ;;  %436 = vst.msk [vmem:[#allocation2 + $0x68] sm:$0xff] (!%p303_p10), %vm421_vm0, %v1930_v0  ;;  %s397_s9 = sadd.s32 (!%p303_p10), 8, %s2044_s13  ;;  %s2908_s0 = sld [smem:[#allocation9_spill]] (!%p303_p10) }
  0x1a   : > { %438 = vst.msk [vmem:[#allocation2 + $0x78] sm:$0xff] (!%p303_p10), %vm421_vm0, %v1930_v0  ;;  %439 = vst.msk [vmem:[#allocation2 + $0x80] sm:$0xff] (!%p303_p10), %vm421_vm0, %v1930_v0  ;;  %p2094_p2 = scmp.lt.s32.totalorder (!%p303_p10), %s397_s9, 15  ;;  %p1654_p4 = scmp.le.s32.totalorder (!%p303_p10), %s1912_s21, 0 }
  0x1b   : > { %441 = vst.msk [vmem:[#allocation2 + $0x90] sm:$0xff] %vm421_vm0, %v1930_v0  ;;  %442 = vst.msk [vmem:[#allocation2 + $0x98] sm:$0xff] %vm421_vm0, %v1930_v0  ;;  %s370_s15 = scalar_select %p369_p12, %s1916_s22, 1 }
  0x1c   : > { %444 = vst.msk [vmem:[#allocation2 + $0xa8] sm:$0xff] %vm421_vm0, %v1930_v0  ;;  %445 = vst.msk [vmem:[#allocation2 + $0xb0] sm:$0xff] %vm421_vm0, %v1930_v0  ;;  %s372_s16 = scalar_select %p371_p13, %s2044_s13, 15 }
  0x1d   : > { %447 = vst.msk [vmem:[#allocation2 + $0xc0] sm:$0xff] %vm421_vm0, %v1930_v0  ;;  %448 = vst.msk [vmem:[#allocation2 + $0xc8] sm:$0xff] %vm421_vm0, %v1930_v0  ;;  %s2084_s17 = sshll.u32 %s370_s15, 5  ;;  %s2927_s9 = smov (!%p2094_p2, %s397_s9), 15 }
  0x1e   : > { %450 = vst.msk [vmem:[#allocation2 + $0xd8] sm:$0xff] %vm421_vm0, %v1930_v0  ;;  %451 = vst.msk [vmem:[#allocation2 + $0xe0] sm:$0xff] %vm421_vm0, %v1930_v0  ;;  %s1634_s27 = sshll.u32 %s372_s16, 1  ;;  %s2931_s9 = smov (!%p2094_p2, %s2927_s9), 15 }
  0x1f   : > { %428 = vst.msk [vmem:[#allocation2 + $0x28] sm:$0x3] %vm424_vm1, %v1930_v0  ;;  %425 = vst.msk [vmem:[#allocation2 + $0x10] sm:$0x3] %vm424_vm1, %v1930_v0  ;;  %s375_s30 = sadd.s32 %s2084_s17, %s1634_s27 }
  0x20   : > { %431 = vst.msk [vmem:[#allocation2 + $0x40] sm:$0x3] %vm424_vm1, %v1930_v0  ;;  %434 = vst.msk [vmem:[#allocation2 + $0x58] sm:$0x3] %vm424_vm1, %v1930_v0  ;;  %s1636_s8 = sshll.u32 %s375_s30, 3 }
  0x21   : > { %437 = vst.msk [vmem:[#allocation2 + $0x70] sm:$0x3] %vm424_vm1, %v1930_v0  ;;  %440 = vst.msk [vmem:[#allocation2 + $0x88] sm:$0x3] %vm424_vm1, %v1930_v0  ;;  %s2092_s28 = scalar_lea.vmem %s2908_s0, %s1636_s8 }
  0x22   : > { %443 = vst.msk [vmem:[#allocation2 + $0xa0] sm:$0x3] %vm424_vm1, %v1930_v0  ;;  %446 = vst.msk [vmem:[#allocation2 + $0xb8] sm:$0x3] %vm424_vm1, %v1930_v0  ;;  %s382_s16 = scalar_select %p381_p0, %s1638_s26, 0  ;;  %v453_v1 = vld [vmem:[%s2092_s28] sm:$0xff] }
  0x23   : > { %449 = vst.msk [vmem:[#allocation2 + $0xd0] sm:$0x3] %vm424_vm1, %v1930_v0  ;;  %452 = vst.msk [vmem:[#allocation2 + $0xe8] sm:$0x3] %vm424_vm1, %v1930_v0  ;;  %v454_v2 = vld [vmem:[%s2092_s28 + $0x8] sm:$0xff]  ;;  %v455_v3 = vld [vmem:[%s2092_s28 + $0x10] sm:$0xff] }
  0x24   : > { %470 = vst.msk [vmem:[#allocation2 + $0x19] sm:$0xff] %vm421_vm0, %v453_v1  ;;  %471 = vst.msk [vmem:[#allocation2 + $0x21] sm:$0xff] %vm421_vm0, %v454_v2  ;;  %v456_v4 = vld [vmem:[%s2092_s28 + $0x18] sm:$0xff]  ;;  %v457_v5 = vld [vmem:[%s2092_s28 + $0x20] sm:$0xff]  ;;  %s2929_s16 = smov (!%p1639_p1, %s382_s16), 15  ;;  %s1651_s26 = sshll.u32 %s2931_s9, 1 }
  0x25   : > { %472 = vst.msk [vmem:[#allocation2 + $0x31] sm:$0xff] %vm421_vm0, %v455_v3  ;;  %v458_v6 = vld [vmem:[%s2092_s28 + $0x28] sm:$0xff]  ;;  %473 = vst.msk [vmem:[#allocation2 + $0x39] sm:$0xff] %vm421_vm0, %v456_v4  ;;  %v459_v7 = vld [vmem:[%s2092_s28 + $0x30] sm:$0xff]  ;;  %s1644_s29 = sshll.u32 %s2929_s16, 1  ;;  %s406_s30 = sadd.s32 %s1651_s26, %s2084_s17 }
  0x26   : > { %474 = vst.msk [vmem:[#allocation2 + $0x49] sm:$0xff] %vm421_vm0, %v457_v5  ;;  %475 = vst.msk [vmem:[#allocation2 + $0x51] sm:$0xff] %vm421_vm0, %v458_v6  ;;  %v460_v8 = vld [vmem:[%s2092_s28 + $0x38] sm:$0xff]  ;;  %v461_v9 = vld [vmem:[%s2092_s28 + $0x40] sm:$0xff]  ;;  %s389_s13 = sadd.s32 %s1644_s29, %s2084_s17  ;;  %s1653_s16 = sshll.u32 %s406_s30, 3 }
  0x27   : > { %476 = vst.msk [vmem:[#allocation2 + $0x61] sm:$0xff] %vm421_vm0, %v459_v7  ;;  %477 = vst.msk [vmem:[#allocation2 + $0x69] sm:$0xff] %vm421_vm0, %v460_v8  ;;  %v462_v10 = vld [vmem:[%s2092_s28 + $0x48] sm:$0xff]  ;;  %v463_v11 = vld [vmem:[%s2092_s28 + $0x50] sm:$0xff]  ;;  %s1646_s27 = sshll.u32 %s389_s13, 3  ;;  %s408_s9 = scalar_lea.vmem %s2896_s2, %s1653_s16 }
  0x28   : > { %478 = vst.msk [vmem:[#allocation2 + $0x79] sm:$0xff] %vm421_vm0, %v461_v9  ;;  %v464_v12 = vld [vmem:[%s2092_s28 + $0x58] sm:$0xff]  ;;  %479 = vst.msk [vmem:[#allocation2 + $0x81] sm:$0xff] %vm421_vm0, %v462_v10  ;;  %v465_v13 = vld [vmem:[%s2092_s28 + $0x60] sm:$0xff]  ;;  %s391_s15 = scalar_lea.vmem %s2895_s1, %s1646_s27  ;;  %s2147_s29 = scalar_lea.vmem [#allocation4], %s2078_s14 }
  0x29   : > { %480 = vst.msk [vmem:[#allocation2 + $0x91] sm:$0xff] %vm421_vm0, %v463_v11  ;;  %481 = vst.msk [vmem:[#allocation2 + $0x99] sm:$0xff] %vm421_vm0, %v464_v12  ;;  %v466_v14 = vld [vmem:[%s2092_s28 + $0x68] sm:$0xff]  ;;  %v467_v15 = vld [vmem:[%s2092_s28 + $0x70] sm:$0xff]  ;;  %489 = sbr.rel (%p1654_p4) target bundleno = 48 (0x30), region = 44 }
  0x2a   : > { %482 = vst.msk [vmem:[#allocation2 + $0xa9] sm:$0xff] %vm421_vm0, %v465_v13  ;;  %483 = vst.msk [vmem:[#allocation2 + $0xb1] sm:$0xff] %vm421_vm0, %v466_v14  ;;  %v468_v16 = vld [vmem:[%s2092_s28 + $0x78] sm:$0xff]  ;;  %v490_v17 = vld [vmem:[%s391_s15] sm:$0xff] (!%p1654_p4) }
  0x2b   : > { %484 = vst.msk [vmem:[#allocation2 + $0xc1] sm:$0xff] %vm421_vm0, %v467_v15  ;;  %485 = vst.msk [vmem:[#allocation2 + $0xc9] sm:$0xff] %vm421_vm0, %v468_v16  ;;  %v491_v18 = vld [vmem:[%s391_s15 + $0x8] sm:$0xff] (!%p1654_p4) }
  0x2c   : > { %492 = vst.msk [vmem:[#allocation2 + $0x1] sm:$0xff] (!%p1654_p4), %vm421_vm0, %v490_v17  ;;  %493 = vst.msk [vmem:[#allocation2 + $0x9] sm:$0xff] (!%p1654_p4), %vm421_vm0, %v491_v18 }
  0x30 PF: > { %p1655_p5 = scmp.ge.s32.totalorder %s1912_s21, 1 }
  0x31   : > { %v498_v19 = vld [vmem:[%s408_s9] sm:$0xff] (!%p1655_p5)  ;;  %v499_v20 = vld [vmem:[%s408_s9 + $0x8] sm:$0xff] (!%p1655_p5) }
  0x32   : > { %497 = sbr.rel (%p1655_p5) target bundleno = 57 (0x39), region = 48  ;;  %501 = vst.msk [vmem:[#allocation2 + $0xd9] sm:$0xff] (!%p1655_p5), %vm421_vm0, %v498_v19  ;;  %502 = vst.msk [vmem:[#allocation2 + $0xe1] sm:$0xff] (!%p1655_p5), %vm421_vm0, %v499_v20 }
  0x39 PF: > { %v2155_v21 = vld [vmem:[#allocation2 + $0x20] sm:$0xff]  ;;  %v2157_v22 = vld [vmem:[#allocation2 + $0x18] sm:$0xff]  ;;  %s1931_s0 = smov 12   ;;  %v2173_v25 = vld [vmem:[#allocation2 + $0x90] sm:$0xff]  ;;  %s1932_s28 = smov 24   ;;  %vm707_vm2 = vcmask 1046528  }
  0x3a   : > { %v2159_v23 = vld [vmem:[#allocation2 + $0x80] sm:$0xff]  ;;  %567 = vrot.lane.b32.xlu1 %v2155_v21, %s1931_s0  ;;  %536 = vst.msk [vmem:[#allocation3 + $0x18] sm:$0xff] %vm421_vm0, %v2155_v21  ;;  %565 = vrot.lane.b32.xlu0 %v2157_v22, %s1931_s0  ;;  %535 = vst.msk [vmem:[#allocation3 + $0x10] sm:$0xff] %vm421_vm0, %v2157_v22  ;;  %v2171_v24 = vld [vmem:[#allocation2 + $0x78] sm:$0xff]  ;;  %v961_v43 = vrot.slane %v2157_v22, 2  ;;  %v962_v44 = vrot.slane %v2155_v21, 2 }
  0x3b   : > { %544 = vst.msk [vmem:[#allocation3 + $0x58] sm:$0xff] %vm421_vm0, %v2159_v23  ;;  %v2175_v26 = vld [vmem:[#allocation2 + $0x30] sm:$0xff]  ;;  %543 = vst.msk [vmem:[#allocation3 + $0x50] sm:$0xff] %vm421_vm0, %v2171_v24  ;;  %v2183_v27 = vld [vmem:[#allocation2 + $0x98] sm:$0xff]  ;;  %vm955_vm3 = vcmask 1045504   ;;  %v986_v50 = vrot.slane %v2173_v25, 2 }
  0x3c   : > { %545 = vst.msk [vmem:[#allocation3 + $0x60] sm:$0xff] %vm421_vm0, %v2173_v25  ;;  %537 = vst.msk [vmem:[#allocation3 + $0x20] sm:$0xff] %vm421_vm0, %v2175_v26  ;;  %v2185_v28 = vld [vmem:[#allocation2 + $0x38] sm:$0xff]  ;;  %v2187_v29 = vld [vmem:[#allocation2 + $0x60] sm:$0xff]  ;;  %v2254_v49 = vsel %vm955_vm3, %v961_v43, %v962_v44  ;;  %v987_v51 = vrot.slane %v2183_v27, 2  ;;  %v966_v52 = vrot.slane %v2175_v26, 2 }
  0x3d   : > { %546 = vst.msk [vmem:[#allocation3 + $0x68] sm:$0xff] %vm421_vm0, %v2183_v27  ;;  %538 = vst.msk [vmem:[#allocation3 + $0x28] sm:$0xff] %vm421_vm0, %v2185_v28  ;;  %v2193_v30 = vld [vmem:[#allocation2 + $0x68] sm:$0xff]  ;;  %v2197_v31 = vld [vmem:[#allocation2] sm:$0xff]  ;;  %v728_v37 = vrot.slane %v2187_v29, 1  ;;  %v967_v53 = vrot.slane %v2185_v28, 2 }
  0x3e   : > { %541 = vst.msk [vmem:[#allocation3 + $0x40] sm:$0xff] %vm421_vm0, %v2187_v29  ;;  %v2199_v32 = vld [vmem:[#allocation2 + $0x8] sm:$0xff]  ;;  %542 = vst.msk [vmem:[#allocation3 + $0x48] sm:$0xff] %vm421_vm0, %v2193_v30  ;;  %583 = vrot.lane.b32.xlu1 %v2159_v23, %s1931_s0  ;;  %581 = vrot.lane.b32.xlu0 %v2171_v24, %s1931_s0  ;;  %v2219_v35 = vld [vmem:[#allocation2 + $0xb0] sm:$0xff]  ;;  %v729_v38 = vrot.slane %v2193_v30, 1  ;;  %v708_v39 = vrot.slane %v2197_v31, 1  ;;  %v2268_v56 = vsel %vm955_vm3, %v986_v50, %v987_v51 }
  0x3f   : > { %533 = vst.msk [vmem:[#allocation3] sm:$0xff] %vm421_vm0, %v2197_v31  ;;  %534 = vst.msk [vmem:[#allocation3 + $0x8] sm:$0xff] %vm421_vm0, %v2199_v32  ;;  %v2211_v33 = vld [vmem:[#allocation2 + $0xa8] sm:$0xff]  ;;  %v2221_v36 = vld [vmem:[#allocation2 + $0x50] sm:$0xff]  ;;  %v709_v40 = vrot.slane %v2199_v32, 1  ;;  %s1933_s12 = smov 4   ;;  %v2273_v57 = vsel %vm955_vm3, %v966_v52, %v967_v53 }
  0x40   : > { %v2213_v34 = vld [vmem:[#allocation2 + $0x48] sm:$0xff]  ;;  %547 = vst.msk [vmem:[#allocation3 + $0x70] sm:$0xff] %vm421_vm0, %v2211_v33  ;;  %548 = vst.msk [vmem:[#allocation3 + $0x78] sm:$0xff] %vm421_vm0, %v2219_v35  ;;  %v2235_v41 = vld [vmem:[#allocation2 + $0x70] sm:$0x3]  ;;  %v2246_v45 = vsel %vm707_vm2, %v728_v37, %v729_v38  ;;  %v733_v54 = vrot.slane %v2171_v24, 1 }
  0x41   : > { %539 = vst.msk [vmem:[#allocation3 + $0x30] sm:$0xff] %vm421_vm0, %v2213_v34  ;;  %540 = vst.msk [vmem:[#allocation3 + $0x38] sm:$0xff] %vm421_vm0, %v2221_v36  ;;  %v2237_v42 = vld [vmem:[#allocation2 + $0x10] sm:$0x3]  ;;  %v731_v46 = vrot.slane %v2235_v41, 1  ;;  %v710_v47 = vsel %vm707_vm2, %v708_v39, %v709_v40  ;;  %v734_v55 = vrot.slane %v2159_v23, 1 }
  0x42   : > { %648 = vrot.lane.b32.xlu1 %v2173_v25, %s1932_s28  ;;  %632 = vrot.lane.b32.xlu0 %v2175_v26, %s1932_s28  ;;  %v711_v48 = vrot.slane %v2237_v42, 1  ;;  %v713_v60 = vrot.slane %v2157_v22, 1  ;;  %v714_v61 = vrot.slane %v2155_v21, 1  ;;  %v2288_v0 = vld [vmem:[#allocation2 + $0x88] sm:$0x3]  ;;  %s1934_s14 = smov 16  }
  0x43   : > { %v2276_v58 = vsel %vm707_vm2, %v729_v38, %v731_v46  ;;  %v2285_v62 = vsel %vm707_vm2, %v733_v54, %v734_v55  ;;  %v2290_v1 = vld [vmem:[#allocation2 + $0x28] sm:$0x3]  ;;  %v736_v2 = vrot.slane %v2288_v0, 1  ;;  %v738_v4 = vrot.slane %v2173_v25, 1  ;;  %s1935_s17 = smov 28   ;;  %s1936_s13 = smov 8  }
  0x44   : > { %v712_v59 = vsel %vm707_vm2, %v709_v40, %v711_v48  ;;  %v715_v63 = vsel %vm707_vm2, %v713_v60, %v714_v61  ;;  %v716_v3 = vrot.slane %v2290_v1, 1  ;;  %v739_v5 = vrot.slane %v2183_v27, 1  ;;  %v2322_v12 = vld [vmem:[#allocation2 + $0xa0] sm:$0x3]  ;;  %s1937_s26 = smov 20   ;;  %v1218_v50 = vld [vmem:[%s2897_s3 + $0x8] sm:$0xff] }
  0x45   : > { %v2304_v6 = vsel %vm707_vm2, %v734_v55, %v736_v2  ;;  %v718_v8 = vrot.slane %v2175_v26, 1  ;;  %v719_v9 = vrot.slane %v2185_v28, 1  ;;  %v2324_v13 = vld [vmem:[#allocation2 + $0x40] sm:$0x3]  ;;  %v741_v14 = vrot.slane %v2322_v12, 1  ;;  %s1938_s15 = smov 32  }
  0x46   : > { %650 = vrot.lane.b32.xlu1 %v2183_v27, %s1932_s28  ;;  %634 = vrot.lane.b32.xlu0 %v2185_v28, %s1932_s28  ;;  %v717_v7 = vsel %vm707_vm2, %v714_v61, %v716_v3  ;;  %v2313_v10 = vsel %vm707_vm2, %v738_v4, %v739_v5  ;;  %v721_v15 = vrot.slane %v2324_v13, 1  ;;  %v976_v17 = vrot.slane %v2187_v29, 2  ;;  %v1217_v48 = vld [vmem:[%s2897_s3] sm:$0xff]  ;;  %v1219_v21 = vld [vmem:[%s2897_s3 + $0x10] sm:$0xff]  ;;  %s1939_s8 = smov [#allocation4]  }
  0x47   : > { %v2316_v11 = vsel %vm707_vm2, %v718_v8, %v719_v9  ;;  %v2337_v16 = vsel %vm707_vm2, %v739_v5, %v741_v14  ;;  %v977_v19 = vrot.slane %v2193_v30, 2  ;;  %v956_v20 = vrot.slane %v2197_v31, 2  ;;  %v2462_v8 = vld [vmem:[#allocation2 + $0x58] sm:$0x3]  ;;  %v2492_v14 = vld [vmem:[#allocation2 + $0xc8] sm:$0xff]  ;;  %s1838_s10 = sshll.u32 %s1939_s8, 4  ;;  %s1839_s10 = int_to_ptr.vmem [resolvable:$false] %s1838_s10 }
  0x48   : > { %v2341_v18 = vsel %vm707_vm2, %v719_v9, %v721_v15  ;;  %v957_v22 = vrot.slane %v2199_v32, 2  ;;  %v979_v31 = vrot.slane %v2235_v41, 2  ;;  %v959_v32 = vrot.slane %v2237_v42, 2 }
  0x49   : > { %v981_v39 = vrot.slane %v2171_v24, 2  ;;  %v982_v40 = vrot.slane %v2159_v23, 2  ;;  %v984_v42 = vrot.slane %v2288_v0, 2  ;;  %v964_v43 = vrot.slane %v2290_v1, 2 }
  0x4a   : > { %764 = vrot.lane.b32.xlu1 %v2246_v45, %s1933_s12  ;;  %748 = vrot.lane.b32.xlu0 %v710_v47, %s1933_s12  ;;  %v2367_v37 = vsel %vm955_vm3, %v977_v19, %v979_v31  ;;  %v960_v38 = vsel %vm955_vm3, %v957_v22, %v959_v32  ;;  %v1739_v52 = vpack.c.bf16 %v1218_v50, %v1217_v48  ;;  %v743_v55 = vrot.slane %v2211_v33, 1 }
  0x4b   : > { %v2376_v41 = vsel %vm955_vm3, %v981_v39, %v982_v40  ;;  %v2392_v46 = vsel %vm955_vm3, %v982_v40, %v984_v42  ;;  %v2397_v47 = vsel %vm955_vm3, %v962_v44, %v964_v43  ;;  %v1220_v44 = vld [vmem:[%s2897_s3 + $0x18] sm:$0xff]  ;;  %v723_v60 = vrot.slane %v2213_v34, 1 }
  0x4c   : > { %1740 = vmatprep.subr.bf16.mxu0 %v1739_v52  ;;  %1747 = vmatprep.subr.bf16.mxu1 %v1739_v52  ;;  %v1743_v54 = vpack.c.bf16 %v1220_v44, %v1219_v21  ;;  %v724_v61 = vrot.slane %v2221_v36, 1  ;;  %vm1278_vm4 = vcmask 1043456   ;;  %v989_v2 = vrot.slane %v2322_v12, 2 }
  0x4d   : > { %1742 = vmatpush3.bf16.msra.mxu0 %v1739_v52  ;;  %1750 = vmatpush3.bf16.msra.mxu1 %v1739_v52  ;;  %v969_v3 = vrot.slane %v2324_v13, 2  ;;  %vm613_vm5 = vcmask 130144   ;;  %vm680_vm6 = vcmask 228544   ;;  %vm796_vm7 = vcmask 64544  }
  0x4e   : > { %766 = vrot.lane.b32.xlu1 %v2276_v58, %s1933_s12  ;;  %750 = vrot.lane.b32.xlu0 %v712_v59, %s1933_s12  ;;  %v744_v59 = vrot.slane %v2219_v35, 1  ;;  %v2438_v1 = vsel %vm707_vm2, %v723_v60, %v724_v61  ;;  %v2449_v4 = vsel %vm955_vm3, %v987_v51, %v989_v2  ;;  %v726_v51 = vrot.slane %v2462_v8, 1 }
  0x4f   : > { %1744 = vmatprep.subr.bf16.mxu0 %v1743_v54  ;;  %1748 = vmatprep.subr.bf16.mxu1 %v1743_v54  ;;  %v2454_v5 = vsel %vm955_vm3, %v967_v53, %v969_v3  ;;  %vm867_vm8 = vcmask 162944   ;;  %v991_v39 = vrot.slane %v2211_v33, 2  ;;  %v971_v40 = vrot.slane %v2213_v34, 2 }
  0x50   : > { %v2435_v0 = vsel %vm707_vm2, %v743_v55, %v744_v59  ;;  %v2480_v9 = vsel %vm707_vm2, %v724_v61, %v726_v51  ;;  %vm938_vm9 = vcmask 261344   ;;  %v815_v52 = vrot.slane %v2492_v14, 1  ;;  %v2597_v51 = vld [vmem:[#allocation2 + $0xd8] sm:$0xff] }
  0x51   : > { %1746 = vmatpush3.bf16.msra.mxu0 %v1743_v54  ;;  %1751 = vmatpush3.bf16.msra.mxu1 %v1743_v54  ;;  %v974_v55 = vrot.slane %v2462_v8, 2  ;;  %vm1044_vm10 = vcmask 97344   ;;  %vm1114_vm11 = vcmask 195744   ;;  %vm1184_vm12 = vcmask 294144  }
  0x52   : > { %835 = vrot.lane.b32.xlu1 %v2285_v62, %s1934_s14  ;;  %819 = vrot.lane.b32.xlu0 %v715_v63, %s1934_s14  ;;  %vm1229_vm13 = vcmask 293888  }
  0x56   : > { %585 = vrot.lane.b32.xlu1 %v2173_v25, %s1931_s0  ;;  %569 = vrot.lane.b32.xlu0 %v2175_v26, %s1931_s0  ;;  %v2351_v25 = vsel %vm955_vm3, %v976_v17, %v977_v19  ;;  %v958_v26 = vsel %vm955_vm3, %v956_v20, %v957_v22 }
  0x5a   : > { %837 = vrot.lane.b32.xlu1 %v2304_v6, %s1934_s14  ;;  %821 = vrot.lane.b32.xlu0 %v717_v7, %s1934_s14 }
  0x5e   : > { %906 = vrot.lane.b32.xlu1 %v2313_v10, %s1935_s17  ;;  %890 = vrot.lane.b32.xlu0 %v2316_v11, %s1935_s17 }
  0x62   : > { %587 = vrot.lane.b32.xlu1 %v2183_v27, %s1931_s0  ;;  %571 = vrot.lane.b32.xlu0 %v2185_v28, %s1931_s0  ;;  %v2468_v27 = vld [vmem:[#allocation2 + $0xc0] sm:$0xff] }
  0x63   : > { %v814_v50 = vrot.slane %v2468_v27, 1 }
  0x65   : > { %v2567_v54 = vsel %vm707_vm2, %v814_v50, %v815_v52  ;;  %v532_v50 = vld [vmem:[#allocation2 + $0xe8] sm:$0x3] }
  0x66   : > { %652 = vrot.lane.b32.xlu1 %v2211_v33, %s1932_s28  ;;  %636 = vrot.lane.b32.xlu0 %v2213_v34, %s1932_s28 }
  0x6a   : > { %908 = vrot.lane.b32.xlu1 %v2337_v16, %s1935_s17  ;;  %892 = vrot.lane.b32.xlu0 %v2341_v18, %s1935_s17 }
  0x6e   : > { %1012 = vrot.lane.b32.xlu1 %v2351_v25, %s1936_s13  ;;  %996 = vrot.lane.b32.xlu0 %v958_v26, %s1936_s13 }
  0x72   : > { %654 = vrot.lane.b32.xlu1 %v2219_v35, %s1932_s28  ;;  %638 = vrot.lane.b32.xlu0 %v2221_v36, %s1932_s28 }
  0x76   : > { %768 = vrot.lane.b32.xlu1 %v2285_v62, %s1933_s12  ;;  %752 = vrot.lane.b32.xlu0 %v715_v63, %s1933_s12  ;;  %v1221_v63 = vld [vmem:[%s2897_s3 + $0x20] sm:$0xf] }
  0x77   : > { %1713 = vmatprep.subr.msk.mxu0 %vm1278_vm4, %v1221_v63  ;;  %1749 = vmatprep.subr.msk.mxu1 %vm1278_vm4, %v1221_v63 }
  0x78   : > { %1714 = vmatpush3.msk.msra.mxu0 %vm1278_vm4, %v1221_v63  ;;  %1752 = vmatpush3.msk.msra.mxu1 %vm1278_vm4, %v1221_v63 }
  0x7a   : > { %1014 = vrot.lane.b32.xlu1 %v2367_v37, %s1936_s13  ;;  %998 = vrot.lane.b32.xlu0 %v960_v38, %s1936_s13 }
  0x7e   : > { %1082 = vrot.lane.b32.xlu1 %v2376_v41, %s1937_s26  ;;  %1066 = vrot.lane.b32.xlu0 %v2254_v49, %s1937_s26 }
  0x82   : > { %770 = vrot.lane.b32.xlu1 %v2304_v6, %s1933_s12  ;;  %754 = vrot.lane.b32.xlu0 %v717_v7, %s1933_s12  ;;  %v2460_v7 = vld [vmem:[#allocation2 + $0xb8] sm:$0x3] }
  0x83   : > { %v746_v28 = vrot.slane %v2460_v7, 1 }
  0x85   : > { %v2477_v53 = vsel %vm707_vm2, %v744_v59, %v746_v28  ;;  %v2589_v28 = vld [vmem:[#allocation2 + $0xd0] sm:$0x3] }
  0x86   : > { %839 = vrot.lane.b32.xlu1 %v2313_v10, %s1934_s14  ;;  %823 = vrot.lane.b32.xlu0 %v2316_v11, %s1934_s14 }
  0x8a   : > { %1084 = vrot.lane.b32.xlu1 %v2392_v46, %s1937_s26  ;;  %1068 = vrot.lane.b32.xlu0 %v2397_v47, %s1937_s26 }
  0x8e   : > { %1152 = vrot.lane.b32.xlu1 %v2268_v56, %s1938_s15  ;;  %1136 = vrot.lane.b32.xlu0 %v2273_v57, %s1938_s15 }
  0x92   : > { %589 = vrot.lane.b32.xlu1 %v2211_v33, %s1931_s0  ;;  %573 = vrot.lane.b32.xlu0 %v2213_v34, %s1931_s0 }
  0x96   : > { %841 = vrot.lane.b32.xlu1 %v2337_v16, %s1934_s14  ;;  %825 = vrot.lane.b32.xlu0 %v2341_v18, %s1934_s14 }
  0x9a   : > { %910 = vrot.lane.b32.xlu1 %v2435_v0, %s1935_s17  ;;  %894 = vrot.lane.b32.xlu0 %v2438_v1, %s1935_s17 }
  0x9e   : > { %1154 = vrot.lane.b32.xlu1 %v2449_v4, %s1938_s15  ;;  %1138 = vrot.lane.b32.xlu0 %v2454_v5, %s1938_s15 }
  0xa2   : > { %591 = vrot.lane.b32.xlu1 %v2219_v35, %s1931_s0  ;;  %575 = vrot.lane.b32.xlu0 %v2221_v36, %s1931_s0 }
  0xa6   : > { %656 = vrot.lane.b32.xlu1 %v2468_v27, %s1932_s28  ;;  %640 = vrot.lane.b32.xlu0 %v2187_v29, %s1932_s28 }
  0xaa   : > { %912 = vrot.lane.b32.xlu1 %v2477_v53, %s1935_s17  ;;  %896 = vrot.lane.b32.xlu0 %v2480_v9, %s1935_s17 }
  0xac   : > { %v568_v12 = vpop.permute.xlu1 %567  ;;  %v566_v13 = vpop.permute.xlu0 %565 }
  0xad   : > { %615 = vst.msk [vmem:[#allocation3 + $0x8] sm:$0xff] %vm613_vm5, %v568_v12  ;;  %614 = vst.msk [vmem:[#allocation3] sm:$0xff] %vm613_vm5, %v566_v13  ;;  %v817_v12 = vrot.slane %v2589_v28, 1 }
  0xae   : > { %1016 = vrot.lane.b32.xlu1 %v2376_v41, %s1936_s13  ;;  %1000 = vrot.lane.b32.xlu0 %v2254_v49, %s1936_s13 }
  0xb0   : > { %v584_v15 = vpop.permute.xlu1 %583  ;;  %v582_v17 = vpop.permute.xlu0 %581 }
  0xb1   : > { %623 = vst.msk [vmem:[#allocation3 + $0x48] sm:$0xff] %vm613_vm5, %v584_v15  ;;  %622 = vst.msk [vmem:[#allocation3 + $0x40] sm:$0xff] %vm613_vm5, %v582_v17  ;;  %v2607_v17 = vsel %vm707_vm2, %v815_v52, %v817_v12  ;;  %v1134_v12 = vrot.slane %v532_v50, 2 }
  0xb2   : > { %658 = vrot.lane.b32.xlu1 %v2492_v14, %s1932_s28  ;;  %642 = vrot.lane.b32.xlu0 %v2193_v30, %s1932_s28 }
  0xb4   : > { %v649_v19 = vpop.permute.xlu1 %648  ;;  %v633_v20 = vpop.permute.xlu0 %632 }
  0xb5   : > { %689 = vst.msk [vmem:[#allocation3 + $0x40] sm:$0xff] %vm680_vm6, %v649_v19  ;;  %681 = vst.msk [vmem:[#allocation3] sm:$0xff] %vm680_vm6, %v633_v20 }
  0xb6   : > { %772 = vrot.lane.b32.xlu1 %v2313_v10, %s1933_s12  ;;  %756 = vrot.lane.b32.xlu0 %v2316_v11, %s1933_s12 }
  0xb8   : > { %v651_v49 = vpop.permute.xlu1 %650  ;;  %v635_v22 = vpop.permute.xlu0 %634 }
  0xb9   : > { %690 = vst.msk [vmem:[#allocation3 + $0x48] sm:$0xff] %vm680_vm6, %v651_v49  ;;  %682 = vst.msk [vmem:[#allocation3 + $0x8] sm:$0xff] %vm680_vm6, %v635_v22 }
  0xba   : > { %1018 = vrot.lane.b32.xlu1 %v2392_v46, %s1936_s13  ;;  %1002 = vrot.lane.b32.xlu0 %v2397_v47, %s1936_s13 }
  0xbc   : > { %v765_v26 = vpop.permute.xlu1 %764  ;;  %v749_v31 = vpop.permute.xlu0 %748 }
  0xbd   : > { %805 = vst.msk [vmem:[#allocation3 + $0x40] sm:$0xff] %vm796_vm7, %v765_v26  ;;  %797 = vst.msk [vmem:[#allocation3] sm:$0xff] %vm796_vm7, %v749_v31 }
  0xbe   : > { %1086 = vrot.lane.b32.xlu1 %v2268_v56, %s1937_s26  ;;  %1070 = vrot.lane.b32.xlu0 %v2273_v57, %s1937_s26 }
  0xc0   : > { %v767_v10 = vpop.permute.xlu1 %766  ;;  %v751_v11 = vpop.permute.xlu0 %750 }
  0xc1   : > { %806 = vst.msk [vmem:[#allocation3 + $0x48] sm:$0xff] %vm796_vm7, %v767_v10  ;;  %798 = vst.msk [vmem:[#allocation3 + $0x8] sm:$0xff] %vm796_vm7, %v751_v11 }
  0xc2   : > { %774 = vrot.lane.b32.xlu1 %v2337_v16, %s1933_s12  ;;  %758 = vrot.lane.b32.xlu0 %v2341_v18, %s1933_s12  ;;  %v992_v16 = vrot.slane %v2219_v35, 2  ;;  %v972_v18 = vrot.slane %v2221_v36, 2 }
  0xc4   : > { %v836_v32 = vpop.permute.xlu1 %835  ;;  %v820_v38 = vpop.permute.xlu0 %819  ;;  %v2541_v33 = vsel %vm955_vm3, %v991_v39, %v992_v16  ;;  %v2544_v35 = vsel %vm955_vm3, %v971_v40, %v972_v18  ;;  %v2581_v63 = vsel %vm955_vm3, %v972_v18, %v974_v55  ;;  %v885_v40 = vrot.slane %v2597_v51, 1 }
  0xc5   : > { %876 = vst.msk [vmem:[#allocation3 + $0x40] sm:$0xff] %vm867_vm8, %v836_v32  ;;  %868 = vst.msk [vmem:[#allocation3] sm:$0xff] %vm867_vm8, %v820_v38  ;;  %v1061_v32 = vrot.slane %v2468_v27, 2 }
  0xc6   : > { %843 = vrot.lane.b32.xlu1 %v2435_v0, %s1934_s14  ;;  %827 = vrot.lane.b32.xlu0 %v2438_v1, %s1934_s14 }
  0xc8   : > { %v586_v42 = vpop.permute.xlu1 %585  ;;  %v570_v43 = vpop.permute.xlu0 %569 }
  0xc9   : > { %624 = vst.msk [vmem:[#allocation3 + $0x50] sm:$0xff] %vm613_vm5, %v586_v42  ;;  %616 = vst.msk [vmem:[#allocation3 + $0x10] sm:$0xff] %vm613_vm5, %v570_v43 }
  0xca   : > { %1088 = vrot.lane.b32.xlu1 %v2449_v4, %s1937_s26  ;;  %1072 = vrot.lane.b32.xlu0 %v2454_v5, %s1937_s26 }
  0xcc   : > { %v838_v34 = vpop.permute.xlu1 %837  ;;  %v822_v36 = vpop.permute.xlu0 %821 }
  0xcd   : > { %877 = vst.msk [vmem:[#allocation3 + $0x48] sm:$0xff] %vm867_vm8, %v838_v34  ;;  %869 = vst.msk [vmem:[#allocation3 + $0x8] sm:$0xff] %vm867_vm8, %v822_v36  ;;  %v1064_v36 = vrot.slane %v2589_v28, 2 }
  0xce   : > { %1156 = vrot.lane.b32.xlu1 %v2541_v33, %s1938_s15  ;;  %1140 = vrot.lane.b32.xlu0 %v2544_v35, %s1938_s15 }
  0xd0   : > { %v907_v47 = vpop.permute.xlu1 %906  ;;  %v891_v48 = vpop.permute.xlu0 %890 }
  0xd1   : > { %947 = vst.msk [vmem:[#allocation3 + $0x40] sm:$0xff] %vm938_vm9, %v907_v47  ;;  %939 = vst.msk [vmem:[#allocation3] sm:$0xff] %vm938_vm9, %v891_v48 }
  0xd2   : > { %593 = vrot.lane.b32.xlu1 %v2468_v27, %s1931_s0  ;;  %577 = vrot.lane.b32.xlu0 %v2187_v29, %s1931_s0  ;;  %v994_v29 = vrot.slane %v2460_v7, 2 }
  0xd4   : > { %v588_v21 = vpop.permute.xlu1 %587  ;;  %v572_v44 = vpop.permute.xlu0 %571  ;;  %v2578_v61 = vsel %vm955_vm3, %v992_v16, %v994_v29 }
  0xd5   : > { %625 = vst.msk [vmem:[#allocation3 + $0x58] sm:$0xff] %vm613_vm5, %v588_v21  ;;  %617 = vst.msk [vmem:[#allocation3 + $0x18] sm:$0xff] %vm613_vm5, %v572_v44  ;;  %v888_v21 = vrot.slane %v532_v50, 1 }
  0xd6   : > { %845 = vrot.lane.b32.xlu1 %v2477_v53, %s1934_s14  ;;  %829 = vrot.lane.b32.xlu0 %v2480_v9, %s1934_s14 }
  0xd8   : > { %v653_v59 = vpop.permute.xlu1 %652  ;;  %v637_v60 = vpop.permute.xlu0 %636 }
  0xd9   : > { %691 = vst.msk [vmem:[#allocation3 + $0x50] sm:$0xff] %vm680_vm6, %v653_v59  ;;  %683 = vst.msk [vmem:[#allocation3 + $0x10] sm:$0xff] %vm680_vm6, %v637_v60 }
  0xda   : > { %914 = vrot.lane.b32.xlu1 %v2567_v54, %s1935_s17  ;;  %898 = vrot.lane.b32.xlu0 %v2246_v45, %s1935_s17 }
  0xdc   : > { %v909_v2 = vpop.permute.xlu1 %908  ;;  %v893_v3 = vpop.permute.xlu0 %892 }
  0xdd   : > { %948 = vst.msk [vmem:[#allocation3 + $0x48] sm:$0xff] %vm938_vm9, %v909_v2  ;;  %940 = vst.msk [vmem:[#allocation3 + $0x8] sm:$0xff] %vm938_vm9, %v893_v3 }
  0xde   : > { %1158 = vrot.lane.b32.xlu1 %v2578_v61, %s1938_s15  ;;  %1142 = vrot.lane.b32.xlu0 %v2581_v63, %s1938_s15 }
  0xe0   : > { %v1013_v7 = vpop.permute.xlu1 %1012  ;;  %v997_v8 = vpop.permute.xlu0 %996 }
  0xe1   : > { %1053 = vst.msk [vmem:[#allocation3 + $0x40] sm:$0xff] %vm1044_vm10, %v1013_v7  ;;  %1045 = vst.msk [vmem:[#allocation3] sm:$0xff] %vm1044_vm10, %v997_v8 }
  0xe2   : > { %595 = vrot.lane.b32.xlu1 %v2492_v14, %s1931_s0  ;;  %579 = vrot.lane.b32.xlu0 %v2193_v30, %s1931_s0  ;;  %s1840_s0 = scalar_lea.vmem %s1839_s10, 4096 }
  0xe4   : > { %v655_v13 = vpop.permute.xlu1 %654  ;;  %v639_v15 = vpop.permute.xlu0 %638 }
  0xe5   : > { %692 = vst.msk [vmem:[#allocation3 + $0x58] sm:$0xff] %vm680_vm6, %v655_v13  ;;  %684 = vst.msk [vmem:[#allocation3 + $0x18] sm:$0xff] %vm680_vm6, %v639_v15 }
  0xe6   : > { %660 = vrot.lane.b32.xlu1 %v2597_v51, %s1932_s28  ;;  %644 = vrot.lane.b32.xlu0 %v2171_v24, %s1932_s28  ;;  %v2621_v24 = vld [vmem:[#allocation2 + $0xe0] sm:$0xff] }
  0xe7   : > { %v886_v18 = vrot.slane %v2621_v24, 1 }
  0xe8   : > { %v769_v30 = vpop.permute.xlu1 %768  ;;  %v753_v19 = vpop.permute.xlu0 %752 }
  0xe9   : > { %807 = vst.msk [vmem:[#allocation3 + $0x50] sm:$0xff] %vm796_vm7, %v769_v30  ;;  %799 = vst.msk [vmem:[#allocation3 + $0x10] sm:$0xff] %vm796_vm7, %v753_v19  ;;  %v887_v34 = vsel %vm707_vm2, %v885_v40, %v886_v18 }
  0xea   : > { %916 = vrot.lane.b32.xlu1 %v2607_v17, %s1935_s17  ;;  %900 = vrot.lane.b32.xlu0 %v2276_v58, %s1935_s17 }
  0xec   : > { %v1015_v20 = vpop.permute.xlu1 %1014  ;;  %v999_v49 = vpop.permute.xlu0 %998 }
  0xed   : > { %1054 = vst.msk [vmem:[#allocation3 + $0x48] sm:$0xff] %vm1044_vm10, %v1015_v20  ;;  %1046 = vst.msk [vmem:[#allocation3 + $0x8] sm:$0xff] %vm1044_vm10, %v999_v49 }
  0xee   : > { %1020 = vrot.lane.b32.xlu1 %v2268_v56, %s1936_s13  ;;  %1004 = vrot.lane.b32.xlu0 %v2273_v57, %s1936_s13 }
  0xf0   : > { %v1083_v22 = vpop.permute.xlu1 %1082  ;;  %v1067_v26 = vpop.permute.xlu0 %1066 }
  0xf1   : > { %1123 = vst.msk [vmem:[#allocation3 + $0x40] sm:$0xff] %vm1114_vm11, %v1083_v22  ;;  %1115 = vst.msk [vmem:[#allocation3] sm:$0xff] %vm1114_vm11, %v1067_v26 }
  0xf2   : > { %662 = vrot.lane.b32.xlu1 %v2621_v24, %s1932_s28  ;;  %646 = vrot.lane.b32.xlu0 %v2159_v23, %s1932_s28 }
  0xf4   : > { %v771_v31 = vpop.permute.xlu1 %770  ;;  %v755_v56 = vpop.permute.xlu0 %754 }
  0xf5   : > { %808 = vst.msk [vmem:[#allocation3 + $0x58] sm:$0xff] %vm796_vm7, %v771_v31  ;;  %800 = vst.msk [vmem:[#allocation3 + $0x18] sm:$0xff] %vm796_vm7, %v755_v56 }
  0xf6   : > { %776 = vrot.lane.b32.xlu1 %v2435_v0, %s1933_s12  ;;  %760 = vrot.lane.b32.xlu0 %v2438_v1, %s1933_s12 }
  0xf8   : > { %v840_v57 = vpop.permute.xlu1 %839  ;;  %v824_v10 = vpop.permute.xlu0 %823 }
  0xf9   : > { %878 = vst.msk [vmem:[#allocation3 + $0x50] sm:$0xff] %vm867_vm8, %v840_v57  ;;  %870 = vst.msk [vmem:[#allocation3 + $0x10] sm:$0xff] %vm867_vm8, %v824_v10 }
  0xfa   : > { %1022 = vrot.lane.b32.xlu1 %v2449_v4, %s1936_s13  ;;  %1006 = vrot.lane.b32.xlu0 %v2454_v5, %s1936_s13 }
  0xfc   : > { %v1085_v23 = vpop.permute.xlu1 %1084  ;;  %v1069_v11 = vpop.permute.xlu0 %1068 }
  0xfd   : > { %1124 = vst.msk [vmem:[#allocation3 + $0x48] sm:$0xff] %vm1114_vm11, %v1085_v23  ;;  %1116 = vst.msk [vmem:[#allocation3 + $0x8] sm:$0xff] %vm1114_vm11, %v1069_v11 }
  0xfe   : > { %1090 = vrot.lane.b32.xlu1 %v2541_v33, %s1937_s26  ;;  %1074 = vrot.lane.b32.xlu0 %v2544_v35, %s1937_s26 }
 0x100   : > { %v1153_v0 = vpop.permute.xlu1 %1152  ;;  %v1137_v1 = vpop.permute.xlu0 %1136 }
 0x101   : > { %1193 = vst.msk [vmem:[#allocation3 + $0x40] sm:$0xff] %vm1184_vm12, %v1153_v0  ;;  %1185 = vst.msk [vmem:[#allocation3] sm:$0xff] %vm1184_vm12, %v1137_v1 }
 0x102   : > { %778 = vrot.lane.b32.xlu1 %v2477_v53, %s1933_s12  ;;  %762 = vrot.lane.b32.xlu0 %v2480_v9, %s1933_s12  ;;  %v1062_v53 = vrot.slane %v2492_v14, 2  ;;  %s1683_s12 = sshll.u32 %s1912_s21, 4  ;;  %s2910_s21 = sand.u32 1, %s1904_s19  }
 0x104   : > { %v590_v4 = vpop.permute.xlu1 %589  ;;  %v574_v5 = vpop.permute.xlu0 %573  ;;  %v1065_v52 = vsel %vm955_vm3, %v1062_v53, %v1064_v36 }
 0x105   : > { %626 = vst.msk [vmem:[#allocation3 + $0x60] sm:$0xff] %vm613_vm5, %v590_v4  ;;  %618 = vst.msk [vmem:[#allocation3 + $0x20] sm:$0xff] %vm613_vm5, %v574_v5 }
 0x106   : > { %847 = vrot.lane.b32.xlu1 %v2567_v54, %s1934_s14  ;;  %831 = vrot.lane.b32.xlu0 %v2246_v45, %s1934_s14  ;;  %v1063_v45 = vsel %vm955_vm3, %v1061_v32, %v1062_v53 }
 0x108   : > { %v842_v38 = vpop.permute.xlu1 %841  ;;  %v826_v39 = vpop.permute.xlu0 %825  ;;  %v1201_v9 = vld [vmem:[#allocation3] sm:$0xff] }
 0x109   : > { %v1209_v16 = vld [vmem:[#allocation3 + $0x40] sm:$0xff]  ;;  %879 = vst.msk [vmem:[#allocation3 + $0x58] sm:$0xff] %vm867_vm8, %v842_v38  ;;  %871 = vst.msk [vmem:[#allocation3 + $0x18] sm:$0xff] %vm867_vm8, %v826_v39  ;;  %1715 = vmatprep.mubr.msk.f32.mxu0 %vm1229_vm13, %v1201_v9 }
 0x10a   : > { %1727 = vmatprep.mubr.msk.f32.mxu1 %vm1229_vm13, %v1209_v16  ;;  %1092 = vrot.lane.b32.xlu1 %v2578_v61, %s1937_s26 }
 0x10b   : > { %1076 = vrot.lane.b32.xlu0 %v2581_v63, %s1937_s26 }
 0x10c   : > { %v911_v27 = vpop.permute.xlu1 %910  ;;  %v895_v14 = vpop.permute.xlu0 %894 }
 0x10d   : > { %949 = vst.msk [vmem:[#allocation3 + $0x50] sm:$0xff] %vm938_vm9, %v911_v27  ;;  %941 = vst.msk [vmem:[#allocation3 + $0x10] sm:$0xff] %vm938_vm9, %v895_v14 }
 0x10e   : > { %1160 = vrot.lane.b32.xlu1 %v1063_v45, %s1938_s15 }
 0x10f   : > { %1144 = vrot.lane.b32.xlu0 %v2351_v25, %s1938_s15 }
 0x110   : > { %v1155_v42 = vpop.permute.xlu1 %1154  ;;  %v1139_v43 = vpop.permute.xlu0 %1138 }
 0x111   : > { %1194 = vst.msk [vmem:[#allocation3 + $0x48] sm:$0xff] %vm1184_vm12, %v1155_v42  ;;  %1186 = vst.msk [vmem:[#allocation3 + $0x8] sm:$0xff] %vm1184_vm12, %v1139_v43 }
 0x112   : > { %849 = vrot.lane.b32.xlu1 %v2607_v17, %s1934_s14 }
 0x113   : > { %833 = vrot.lane.b32.xlu0 %v2276_v58, %s1934_s14  ;;  %s1677_s14 = sshll.u32 %s1916_s22, 5  ;;  %s2841_s22 = scalar_lea.sflag [#allocation5], %s2910_s21 }
 0x114   : > { %v592_v47 = vpop.permute.xlu1 %591  ;;  %v576_v48 = vpop.permute.xlu0 %575 }
 0x115   : > { %627 = vst.msk [vmem:[#allocation3 + $0x68] sm:$0xff] %vm613_vm5, %v592_v47  ;;  %619 = vst.msk [vmem:[#allocation3 + $0x28] sm:$0xff] %vm613_vm5, %v576_v48 }
 0x116   : > { %918 = vrot.lane.b32.xlu1 %v887_v34, %s1935_s17 }
 0x117   : > { %902 = vrot.lane.b32.xlu0 %v2285_v62, %s1935_s17  ;;  %v889_v62 = vsel %vm707_vm2, %v886_v18, %v888_v21 }
 0x118   : > { %v657_v58 = vpop.permute.xlu1 %656  ;;  %v641_v44 = vpop.permute.xlu0 %640  ;;  %v1202_v54 = vld [vmem:[#allocation3 + $0x8] sm:$0xff] }
 0x119   : > { %v1210_v29 = vld [vmem:[#allocation3 + $0x48] sm:$0xff]  ;;  %693 = vst.msk [vmem:[#allocation3 + $0x60] sm:$0xff] %vm680_vm6, %v657_v58  ;;  %685 = vst.msk [vmem:[#allocation3 + $0x20] sm:$0xff] %vm680_vm6, %v641_v44  ;;  %1716 = vmatmul.mubr.msk.f32.vlgmr.msra.gmra.mrb[0].mxu0 %vm1229_vm13, %v1202_v54 }
 0x11a   : > { %1728 = vmatmul.mubr.msk.f32.vlgmr.msra.gmra.mrb[0].mxu1 %vm1229_vm13, %v1210_v29  ;;  %1162 = vrot.lane.b32.xlu1 %v1065_v52, %s1938_s15 }
 0x11b   : > { %1146 = vrot.lane.b32.xlu0 %v2367_v37, %s1938_s15 }
 0x11c   : > { %v913_v55 = vpop.permute.xlu1 %912  ;;  %v897_v59 = vpop.permute.xlu0 %896 }
 0x11d   : > { %950 = vst.msk [vmem:[#allocation3 + $0x58] sm:$0xff] %vm938_vm9, %v913_v55  ;;  %942 = vst.msk [vmem:[#allocation3 + $0x18] sm:$0xff] %vm938_vm9, %v897_v59 }
 0x11e   : > { %920 = vrot.lane.b32.xlu1 %v889_v62, %s1935_s17 }
 0x11f   : > { %904 = vrot.lane.b32.xlu0 %v2304_v6, %s1935_s17  ;;  %s1458_s17 = sadd.s32 %s1683_s12, %s1677_s14 }
 0x120   : > { %v1017_v60 = vpop.permute.xlu1 %1016  ;;  %v1001_v2 = vpop.permute.xlu0 %1000 }
 0x121   : > { %1055 = vst.msk [vmem:[#allocation3 + $0x50] sm:$0xff] %vm1044_vm10, %v1017_v60  ;;  %1047 = vst.msk [vmem:[#allocation3 + $0x10] sm:$0xff] %vm1044_vm10, %v1001_v2 }
 0x122   : > { %1024 = vrot.lane.b32.xlu1 %v2541_v33, %s1936_s13  ;;  %v1131_v33 = vrot.slane %v2597_v51, 2 }
 0x123   : > { %1008 = vrot.lane.b32.xlu0 %v2544_v35, %s1936_s13  ;;  %v1132_v35 = vrot.slane %v2621_v24, 2 }
 0x124   : > { %v659_v3 = vpop.permute.xlu1 %658  ;;  %v643_v7 = vpop.permute.xlu0 %642 }
 0x125   : > { %694 = vst.msk [vmem:[#allocation3 + $0x68] sm:$0xff] %vm680_vm6, %v659_v3  ;;  %686 = vst.msk [vmem:[#allocation3 + $0x28] sm:$0xff] %vm680_vm6, %v643_v7  ;;  %v1135_v51 = vsel %vm955_vm3, %v1132_v35, %v1134_v12 }
 0x126   : > { %1026 = vrot.lane.b32.xlu1 %v2578_v61, %s1936_s13 }
 0x127   : > { %1010 = vrot.lane.b32.xlu0 %v2581_v63, %s1936_s13  ;;  %v1133_v63 = vsel %vm955_vm3, %v1131_v33, %v1132_v35 }
 0x128   : > { %v773_v6 = vpop.permute.xlu1 %772  ;;  %v757_v8 = vpop.permute.xlu0 %756 }
 0x129   : > { %809 = vst.msk [vmem:[#allocation3 + $0x60] sm:$0xff] %vm796_vm7, %v773_v6  ;;  %801 = vst.msk [vmem:[#allocation3 + $0x20] sm:$0xff] %vm796_vm7, %v757_v8 }
 0x12a   : > { %1094 = vrot.lane.b32.xlu1 %v1063_v45, %s1937_s26 }
 0x12b   : > { %1078 = vrot.lane.b32.xlu0 %v2351_v25, %s1937_s26 }
 0x12c   : > { %v1019_v28 = vpop.permute.xlu1 %1018  ;;  %v1003_v61 = vpop.permute.xlu0 %1002 }
 0x12d   : > { %1056 = vst.msk [vmem:[#allocation3 + $0x58] sm:$0xff] %vm1044_vm10, %v1019_v28  ;;  %1048 = vst.msk [vmem:[#allocation3 + $0x18] sm:$0xff] %vm1044_vm10, %v1003_v61 }
 0x12e   : > { %1096 = vrot.lane.b32.xlu1 %v1065_v52, %s1937_s26 }
 0x12f   : > { %1080 = vrot.lane.b32.xlu0 %v2367_v37, %s1937_s26  ;;  %s1678_s26 = sshll.u32 %s1458_s17, 7 }
 0x130   : > { %v1087_v13 = vpop.permute.xlu1 %1086  ;;  %v1071_v25 = vpop.permute.xlu0 %1070  ;;  %s2831_s27 = scalar_lea.hbm %s2899_s5, %s1678_s26 }
 0x131   : > { %1125 = vst.msk [vmem:[#allocation3 + $0x50] sm:$0xff] %vm1114_vm11, %v1087_v13  ;;  %1117 = vst.msk [vmem:[#allocation3 + $0x10] sm:$0xff] %vm1114_vm11, %v1071_v25 }
 0x132   : > { %1164 = vrot.lane.b32.xlu1 %v1133_v63, %s1938_s15 }
 0x133   : > { %1148 = vrot.lane.b32.xlu0 %v2376_v41, %s1938_s15 }
 0x134   : > { %v775_v15 = vpop.permute.xlu1 %774  ;;  %v759_v17 = vpop.permute.xlu0 %758 }
 0x135   : > { %810 = vst.msk [vmem:[#allocation3 + $0x68] sm:$0xff] %vm796_vm7, %v775_v15  ;;  %802 = vst.msk [vmem:[#allocation3 + $0x28] sm:$0xff] %vm796_vm7, %v759_v17 }
 0x136   : > { %1166 = vrot.lane.b32.xlu1 %v1135_v51, %s1938_s15 }
 0x137   : > { %1150 = vrot.lane.b32.xlu0 %v2392_v46, %s1938_s15  ;;  %s1461_s15 = sshll.u32 %s2147_s29, 4  ;;  %s2833_s15 = int_to_ptr.vmem [resolvable:$true] %s1461_s15 }
 0x138   : > { %v844_v37 = vpop.permute.xlu1 %843  ;;  %v828_v30 = vpop.permute.xlu0 %827  ;;  %s1834_s30 = scalar_lea.vmem %s2833_s15, 2048  ;;  %p1841_p10 = scmp.lt.s32.totalorder %s2833_s15, %s1839_s10 }
 0x139   : > { %880 = vst.msk [vmem:[#allocation3 + $0x60] sm:$0xff] %vm867_vm8, %v844_v37  ;;  %872 = vst.msk [vmem:[#allocation3 + $0x20] sm:$0xff] %vm867_vm8, %v828_v30  ;;  %p1835_p6 = scmp.ne.s32.totalorder %s2833_s15, %s1834_s30  ;;  %p1842_p11 = scmp.lt.s32.totalorder %s1840_s0, %s1834_s30 }
 0x13b   : > { %p1836_p7 = pnand %p1835_p6, %p2022_p3  ;;  %p1843_p12 = por %p1842_p11, %p1841_p10 }
 0x13c   : > { %v1089_v41 = vpop.permute.xlu1 %1088  ;;  %v1073_v19 = vpop.permute.xlu0 %1072 }
 0x13d   : > { %1126 = vst.msk [vmem:[#allocation3 + $0x58] sm:$0xff] %vm1114_vm11, %v1089_v41  ;;  %1118 = vst.msk [vmem:[#allocation3 + $0x18] sm:$0xff] %vm1114_vm11, %v1073_v19  ;;  %p1837_p9 = pneg %p1836_p7 }
 0x13f   : > { %p1844_p13 = pnand %p1843_p12, %p1837_p9 }
 0x140   : > { %v1157_v20 = vpop.permute.xlu1 %1156  ;;  %v1141_v49 = vpop.permute.xlu0 %1140 }
 0x141   : > { %1195 = vst.msk [vmem:[#allocation3 + $0x50] sm:$0xff] %vm1184_vm12, %v1157_v20  ;;  %1187 = vst.msk [vmem:[#allocation3 + $0x10] sm:$0xff] %vm1184_vm12, %v1141_v49 }
 0x144   : > { %v594_v24 = vpop.permute.xlu1 %593  ;;  %v578_v46 = vpop.permute.xlu0 %577 }
 0x145   : > { %628 = vst.msk [vmem:[#allocation3 + $0x70] sm:$0xff] %vm613_vm5, %v594_v24  ;;  %620 = vst.msk [vmem:[#allocation3 + $0x30] sm:$0xff] %vm613_vm5, %v578_v46  ;;  %v1656_v24 = vld [vmem:[%s2898_s4] ss:$0 sm:$0xff] }
 0x148   : > { %v846_v22 = vpop.permute.xlu1 %845  ;;  %v830_v26 = vpop.permute.xlu0 %829  ;;  %v1203_v31 = vld [vmem:[#allocation3 + $0x10] sm:$0xff] }
 0x149   : > { %v1211_v56 = vld [vmem:[#allocation3 + $0x50] sm:$0xff]  ;;  %881 = vst.msk [vmem:[#allocation3 + $0x68] sm:$0xff] %vm867_vm8, %v846_v22  ;;  %873 = vst.msk [vmem:[#allocation3 + $0x28] sm:$0xff] %vm867_vm8, %v830_v26  ;;  %1718 = vmatprep.mubr.msk.f32.mxu0 %vm1229_vm13, %v1203_v31 }
 0x14a   : > { %1730 = vmatprep.mubr.msk.f32.mxu1 %vm1229_vm13, %v1211_v56 }
 0x14c   : > { %v915_v57 = vpop.permute.xlu1 %914  ;;  %v899_v10 = vpop.permute.xlu0 %898 }
 0x14d   : > { %951 = vst.msk [vmem:[#allocation3 + $0x60] sm:$0xff] %vm938_vm9, %v915_v57  ;;  %943 = vst.msk [vmem:[#allocation3 + $0x20] sm:$0xff] %vm938_vm9, %v899_v10 }
 0x150   : > { %v1159_v23 = vpop.permute.xlu1 %1158  ;;  %v1143_v11 = vpop.permute.xlu0 %1142 }
 0x151   : > { %1196 = vst.msk [vmem:[#allocation3 + $0x58] sm:$0xff] %vm1184_vm12, %v1159_v23  ;;  %1188 = vst.msk [vmem:[#allocation3 + $0x18] sm:$0xff] %vm1184_vm12, %v1143_v11 }
 0x154   : > { %v596_v0 = vpop.permute.xlu1 %595  ;;  %v580_v1 = vpop.permute.xlu0 %579 }
 0x155   : > { %629 = vst.msk [vmem:[#allocation3 + $0x78] sm:$0xff] %vm613_vm5, %v596_v0  ;;  %621 = vst.msk [vmem:[#allocation3 + $0x38] sm:$0xff] %vm613_vm5, %v580_v1 }
 0x158   : > { %v661_v4 = vpop.permute.xlu1 %660  ;;  %v645_v5 = vpop.permute.xlu0 %644  ;;  %v1204_v32 = vld [vmem:[#allocation3 + $0x18] sm:$0xff] }
 0x159   : > { %v1212_v53 = vld [vmem:[#allocation3 + $0x58] sm:$0xff]  ;;  %695 = vst.msk [vmem:[#allocation3 + $0x70] sm:$0xff] %vm680_vm6, %v661_v4  ;;  %687 = vst.msk [vmem:[#allocation3 + $0x30] sm:$0xff] %vm680_vm6, %v645_v5  ;;  %1719 = vmatmul.mubr.msk.f32.gmra.mrb[2].mxu0 %vm1229_vm13, %v1204_v32 }
 0x15a   : > { %1731 = vmatmul.mubr.msk.f32.gmra.mrb[2].mxu1 %vm1229_vm13, %v1212_v53 }
 0x15c   : > { %v917_v38 = vpop.permute.xlu1 %916  ;;  %v901_v39 = vpop.permute.xlu0 %900 }
 0x15d   : > { %952 = vst.msk [vmem:[#allocation3 + $0x68] sm:$0xff] %vm938_vm9, %v917_v38  ;;  %944 = vst.msk [vmem:[#allocation3 + $0x28] sm:$0xff] %vm938_vm9, %v901_v39 }
 0x160   : > { %v1021_v9 = vpop.permute.xlu1 %1020  ;;  %v1005_v16 = vpop.permute.xlu0 %1004 }
 0x161   : > { %1057 = vst.msk [vmem:[#allocation3 + $0x60] sm:$0xff] %vm1044_vm10, %v1021_v9  ;;  %1049 = vst.msk [vmem:[#allocation3 + $0x20] sm:$0xff] %vm1044_vm10, %v1005_v16 }
 0x164   : > { %v663_v45 = vpop.permute.xlu1 %662  ;;  %v647_v27 = vpop.permute.xlu0 %646 }
 0x165   : > { %696 = vst.msk [vmem:[#allocation3 + $0x78] sm:$0xff] %vm680_vm6, %v663_v45  ;;  %688 = vst.msk [vmem:[#allocation3 + $0x38] sm:$0xff] %vm680_vm6, %v647_v27 }
 0x168   : > { %v777_v14 = vpop.permute.xlu1 %776  ;;  %v761_v40 = vpop.permute.xlu0 %760 }
 0x169   : > { %811 = vst.msk [vmem:[#allocation3 + $0x70] sm:$0xff] %vm796_vm7, %v777_v14  ;;  %803 = vst.msk [vmem:[#allocation3 + $0x30] sm:$0xff] %vm796_vm7, %v761_v40 }
 0x16c   : > { %v1023_v18 = vpop.permute.xlu1 %1022  ;;  %v1007_v42 = vpop.permute.xlu0 %1006 }
 0x16d   : > { %1058 = vst.msk [vmem:[#allocation3 + $0x68] sm:$0xff] %vm1044_vm10, %v1023_v18  ;;  %1050 = vst.msk [vmem:[#allocation3 + $0x28] sm:$0xff] %vm1044_vm10, %v1007_v42 }
 0x170   : > { %v1091_v43 = vpop.permute.xlu1 %1090  ;;  %v1075_v34 = vpop.permute.xlu0 %1074 }
 0x171   : > { %1127 = vst.msk [vmem:[#allocation3 + $0x60] sm:$0xff] %vm1114_vm11, %v1091_v43  ;;  %1119 = vst.msk [vmem:[#allocation3 + $0x20] sm:$0xff] %vm1114_vm11, %v1075_v34 }
 0x174   : > { %v779_v36 = vpop.permute.xlu1 %778  ;;  %v763_v47 = vpop.permute.xlu0 %762 }
 0x175   : > { %812 = vst.msk [vmem:[#allocation3 + $0x78] sm:$0xff] %vm796_vm7, %v779_v36  ;;  %804 = vst.msk [vmem:[#allocation3 + $0x38] sm:$0xff] %vm796_vm7, %v763_v47 }
 0x178   : > { %v848_v48 = vpop.permute.xlu1 %847  ;;  %v832_v50 = vpop.permute.xlu0 %831 }
 0x179   : > { %882 = vst.msk [vmem:[#allocation3 + $0x70] sm:$0xff] %vm867_vm8, %v848_v48  ;;  %874 = vst.msk [vmem:[#allocation3 + $0x30] sm:$0xff] %vm867_vm8, %v832_v50 }
 0x17c   : > { %v1093_v52 = vpop.permute.xlu1 %1092 }
 0x17d   : > { %v1077_v21 = vpop.permute.xlu0 %1076  ;;  %1128 = vst.msk [vmem:[#allocation3 + $0x68] sm:$0xff] %vm1114_vm11, %v1093_v52 }
 0x17e   : > { %1120 = vst.msk [vmem:[#allocation3 + $0x28] sm:$0xff] %vm1114_vm11, %v1077_v21 }
 0x180   : > { %v1161_v58 = vpop.permute.xlu1 %1160 }
 0x181   : > { %v1145_v44 = vpop.permute.xlu0 %1144  ;;  %1197 = vst.msk [vmem:[#allocation3 + $0x60] sm:$0xff] %vm1184_vm12, %v1161_v58 }
 0x182   : > { %1189 = vst.msk [vmem:[#allocation3 + $0x20] sm:$0xff] %vm1184_vm12, %v1145_v44 }
 0x184   : > { %v850_v54 = vpop.permute.xlu1 %849 }
 0x185   : > { %v834_v29 = vpop.permute.xlu0 %833  ;;  %883 = vst.msk [vmem:[#allocation3 + $0x78] sm:$0xff] %vm867_vm8, %v850_v54 }
 0x186   : > { %875 = vst.msk [vmem:[#allocation3 + $0x38] sm:$0xff] %vm867_vm8, %v834_v29 }
 0x188   : > { %v919_v62 = vpop.permute.xlu1 %918  ;;  %v1213_v60 = vld [vmem:[#allocation3 + $0x60] sm:$0xff] }
 0x189   : > { %v903_v55 = vpop.permute.xlu0 %902  ;;  %v1205_v59 = vld [vmem:[#allocation3 + $0x20] sm:$0xff]  ;;  %953 = vst.msk [vmem:[#allocation3 + $0x70] sm:$0xff] %vm938_vm9, %v919_v62  ;;  %1733 = vmatprep.mubr.msk.f32.mxu1 %vm1229_vm13, %v1213_v60 }
 0x18a   : > { %945 = vst.msk [vmem:[#allocation3 + $0x30] sm:$0xff] %vm938_vm9, %v903_v55  ;;  %1721 = vmatprep.mubr.msk.f32.mxu0 %vm1229_vm13, %v1205_v59 }
 0x18c   : > { %v1163_v2 = vpop.permute.xlu1 %1162 }
 0x18d   : > { %v1147_v3 = vpop.permute.xlu0 %1146  ;;  %1198 = vst.msk [vmem:[#allocation3 + $0x68] sm:$0xff] %vm1184_vm12, %v1163_v2 }
 0x18e   : > { %1190 = vst.msk [vmem:[#allocation3 + $0x28] sm:$0xff] %vm1184_vm12, %v1147_v3 }
 0x190   : > { %v921_v7 = vpop.permute.xlu1 %920 }
 0x191   : > { %v905_v6 = vpop.permute.xlu0 %904  ;;  %954 = vst.msk [vmem:[#allocation3 + $0x78] sm:$0xff] %vm938_vm9, %v921_v7 }
 0x192   : > { %946 = vst.msk [vmem:[#allocation3 + $0x38] sm:$0xff] %vm938_vm9, %v905_v6 }
 0x194   : > { %v1025_v8 = vpop.permute.xlu1 %1024  ;;  %v1214_v28 = vld [vmem:[#allocation3 + $0x68] sm:$0xff] }
 0x195   : > { %v1009_v33 = vpop.permute.xlu0 %1008  ;;  %v1206_v35 = vld [vmem:[#allocation3 + $0x28] sm:$0xff]  ;;  %1059 = vst.msk [vmem:[#allocation3 + $0x70] sm:$0xff] %vm1044_vm10, %v1025_v8  ;;  %1734 = vmatmul.mubr.msk.f32.gmra.mrb[4].mxu1 %vm1229_vm13, %v1214_v28 }
 0x196   : > { %1051 = vst.msk [vmem:[#allocation3 + $0x30] sm:$0xff] %vm1044_vm10, %v1009_v33  ;;  %1722 = vmatmul.mubr.msk.f32.gmra.mrb[4].mxu0 %vm1229_vm13, %v1206_v35 }
 0x198   : > { %v1027_v61 = vpop.permute.xlu1 %1026 }
 0x199   : > { %v1011_v63 = vpop.permute.xlu0 %1010  ;;  %1060 = vst.msk [vmem:[#allocation3 + $0x78] sm:$0xff] %vm1044_vm10, %v1027_v61 }
 0x19a   : > { %1052 = vst.msk [vmem:[#allocation3 + $0x38] sm:$0xff] %vm1044_vm10, %v1011_v63 }
 0x19c   : > { %v1095_v12 = vpop.permute.xlu1 %1094 }
 0x19d   : > { %v1079_v13 = vpop.permute.xlu0 %1078  ;;  %1129 = vst.msk [vmem:[#allocation3 + $0x70] sm:$0xff] %vm1114_vm11, %v1095_v12 }
 0x19e   : > { %1121 = vst.msk [vmem:[#allocation3 + $0x30] sm:$0xff] %vm1114_vm11, %v1079_v13 }
 0x1a0   : > { %v1097_v25 = vpop.permute.xlu1 %1096 }
 0x1a1   : > { %v1081_v51 = vpop.permute.xlu0 %1080  ;;  %1130 = vst.msk [vmem:[#allocation3 + $0x78] sm:$0xff] %vm1114_vm11, %v1097_v25 }
 0x1a2   : > { %1122 = vst.msk [vmem:[#allocation3 + $0x38] sm:$0xff] %vm1114_vm11, %v1081_v51 }
 0x1a4   : > { %v1165_v15 = vpop.permute.xlu1 %1164 }
 0x1a5   : > { %v1149_v17 = vpop.permute.xlu0 %1148  ;;  %1199 = vst.msk [vmem:[#allocation3 + $0x70] sm:$0xff] %vm1184_vm12, %v1165_v15 }
 0x1a6   : > { %1191 = vst.msk [vmem:[#allocation3 + $0x30] sm:$0xff] %vm1184_vm12, %v1149_v17 }
 0x1a8   : > { %v1167_v37 = vpop.permute.xlu1 %1166 }
 0x1a9   : > { %v1151_v30 = vpop.permute.xlu0 %1150  ;;  %1200 = vst.msk [vmem:[#allocation3 + $0x78] sm:$0xff] %vm1184_vm12, %v1167_v37 }
 0x1aa   : > { %1192 = vst.msk [vmem:[#allocation3 + $0x38] sm:$0xff] %vm1184_vm12, %v1151_v30 }
 0x1ac   : > { %v1215_v19 = vld [vmem:[#allocation3 + $0x70] sm:$0xff] }
 0x1ad   : > { %v1207_v41 = vld [vmem:[#allocation3 + $0x30] sm:$0xff]  ;;  %1736 = vmatprep.mubr.msk.f32.mxu1 %vm1229_vm13, %v1215_v19 }
 0x1ae   : > { %1724 = vmatprep.mubr.msk.f32.mxu0 %vm1229_vm13, %v1207_v41 }
 0x1b0   : > { %v1216_v49 = vld [vmem:[#allocation3 + $0x78] sm:$0xff] }
 0x1b1   : > { %v1208_v20 = vld [vmem:[#allocation3 + $0x38] sm:$0xff]  ;;  %1737 = vmatmul.mubr.msk.f32.gmra.mrb[6].mxu1 %vm1229_vm13, %v1216_v49 }
 0x1b2   : > { %1725 = vmatmul.mubr.msk.f32.gmra.mrb[6].mxu0 %vm1229_vm13, %v1208_v20 }
 0x1ec   : > { %v1717_v46 = vpop.f32.mrb[0].mxu0 }
 0x1ed   : > { %v1729_v22 = vpop.f32.mrb[0].mxu1  ;;  %v1354_v26 = vadd.f32 %v1717_v46, %v1656_v24  ;;  %v1348_v56 = vpop.f32.mrb[1].mxu0 }
 0x1ee   : > { %v1394_v31 = vadd.f32 %v1729_v22, %v1656_v24  ;;  %v1388_v57 = vpop.f32.mrb[1].mxu1  ;;  %v1349_v10 = vadd.f32 %v1656_v24, %v1348_v56 }
 0x1ef   : > { %v1389_v23 = vadd.f32 %v1656_v24, %v1388_v57  ;;  %1428 = vst [vmem:[%s2147_s29 + $0x8] sm:$0xff] %v1354_v26 }
 0x1f0   : > { %1436 = vst [vmem:[%s2147_s29 + $0x48] sm:$0xff] %v1394_v31  ;;  %1427 = vst [vmem:[%s2147_s29] sm:$0xff] %v1349_v10 }
 0x1f1   : > { %1435 = vst [vmem:[%s2147_s29 + $0x40] sm:$0xff] %v1389_v23 }
 0x22c   : > { %v1720_v11 = vpop.f32.mrb[2].mxu0 }
 0x22d   : > { %v1732_v0 = vpop.f32.mrb[2].mxu1  ;;  %v1364_v1 = vadd.f32 %v1720_v11, %v1656_v24  ;;  %v1358_v5 = vpop.f32.mrb[3].mxu0 }
 0x22e   : > { %v1404_v4 = vadd.f32 %v1732_v0, %v1656_v24  ;;  %v1398_v32 = vpop.f32.mrb[3].mxu1  ;;  %v1359_v53 = vadd.f32 %v1656_v24, %v1358_v5 }
 0x22f   : > { %v1399_v38 = vadd.f32 %v1656_v24, %v1398_v32  ;;  %1430 = vst [vmem:[%s2147_s29 + $0x18] sm:$0xff] %v1364_v1 }
 0x230   : > { %1438 = vst [vmem:[%s2147_s29 + $0x58] sm:$0xff] %v1404_v4  ;;  %1429 = vst [vmem:[%s2147_s29 + $0x10] sm:$0xff] %v1359_v53 }
 0x231   : > { %1437 = vst [vmem:[%s2147_s29 + $0x50] sm:$0xff] %v1399_v38 }
 0x268   : > { %v1735_v9 = vpop.f32.mrb[4].mxu1 }
 0x269   : > { %v1723_v39 = vpop.f32.mrb[4].mxu0  ;;  %v1414_v45 = vadd.f32 %v1735_v9, %v1656_v24  ;;  %v1408_v14 = vpop.f32.mrb[5].mxu1 }
 0x26a   : > { %v1374_v16 = vadd.f32 %v1723_v39, %v1656_v24  ;;  %v1368_v27 = vpop.f32.mrb[5].mxu0  ;;  %v1409_v18 = vadd.f32 %v1656_v24, %v1408_v14 }
 0x26b   : > { %v1369_v40 = vadd.f32 %v1656_v24, %v1368_v27  ;;  %1440 = vst [vmem:[%s2147_s29 + $0x68] sm:$0xff] %v1414_v45 }
 0x26c   : > { %1432 = vst [vmem:[%s2147_s29 + $0x28] sm:$0xff] %v1374_v16  ;;  %1439 = vst [vmem:[%s2147_s29 + $0x60] sm:$0xff] %v1409_v18 }
 0x26d   : > { %1431 = vst [vmem:[%s2147_s29 + $0x20] sm:$0xff] %v1369_v40 }
 0x284   : > { %v1738_v43 = vpop.f32.mrb[6].mxu1 }
 0x285   : > { %v1726_v42 = vpop.f32.mrb[6].mxu0  ;;  %v1424_v36 = vadd.f32 %v1738_v43, %v1656_v24  ;;  %v1418_v48 = vpop.f32.mrb[7].mxu1 }
 0x286   : > { %v1384_v34 = vadd.f32 %v1726_v42, %v1656_v24  ;;  %v1378_v47 = vpop.f32.mrb[7].mxu0  ;;  %v1419_v52 = vadd.f32 %v1656_v24, %v1418_v48 }
 0x287   : > { %v1379_v50 = vadd.f32 %v1656_v24, %v1378_v47  ;;  %1442 = vst [vmem:[%s2147_s29 + $0x78] sm:$0xff] %v1424_v36 }
 0x288   : > { %1434 = vst [vmem:[%s2147_s29 + $0x38] sm:$0xff] %v1384_v34  ;;  %1441 = vst [vmem:[%s2147_s29 + $0x70] sm:$0xff] %v1419_v52 }
 0x289   : > { %1433 = vst [vmem:[%s2147_s29 + $0x30] sm:$0xff] %v1379_v50 }
 0x28a   : > { %1847 = shalt.err (!%p1844_p13)
}
 0x28b   : > { %s1848_s29 = scalar_lea.hbm %s2831_s27, 2048  ;;  %s1852_s14 = scalar_lea.hbm %s2899_s5, 8192 }
 0x28c   : > { %p1849_p0 = scmp.ne.s32.totalorder %s2831_s27, %s1848_s29  ;;  %p1853_p4 = scmp.lt.u32.totalorder %s2831_s27, %s2899_s5 }
 0x28d   : > { %p1854_p5 = scmp.lt.u32.totalorder %s1852_s14, %s1848_s29  ;;  %p1856_p7 = scmp.lt.u32.totalorder %s1848_s29, %s2831_s27 }
 0x28e   : > { %p1850_p1 = pnand %p1849_p0, %p2022_p3 }
 0x28f   : > { %p1855_p6 = por %p1854_p5, %p1853_p4 }
 0x290   : > { %p1851_p2 = pneg %p1850_p1 }
 0x291   : > { %p1857_p9 = por %p1856_p7, %p1855_p6 }
 0x293   : > { %p1858_p10 = pnand %p1857_p9, %p1851_p2 }
 0x295   : > { %1861 = shalt.err (!%p1858_p10)
}
 0x296   : > { %s1940_s16 = smov 128  }
 0x297   : > { %1753 = dma.vmem_to_hbm [thread:$0]  (%p2022_p3), %s2833_s15, 2048, %s2831_s27, %s2841_s22, %s1940_s16, %s1940_s16, %s1936_s13  }
 0x298 PF: > { %p1759_p11 = scmp.ge.s32.totalorder %s1928_s25, 2  ;;  %s1476_s9 = sand.u32 1, %s1900_s18  }
 0x299   : > { %s1477_s21 = scalar_lea.sflag [#allocation5], %s1476_s9 }
 0x29a   : > { %p1756_p12 = pnand %p1759_p11, %p2031_p8 }
 0x29c   : > { %1895 = dma.done.wait (!%p1756_p12), %s1477_s21, 2048  }
 0x29d   : > { %1897 = vsyncadd (!%p1756_p12), %s1477_s21, 4294965248  ;;  %s18_s25 = sadd.s32 1, %s1928_s25   ;;  %s2911_s6 = sld [smem:[#allocation7_spill]] }
 0x29e   : > { %p15_p13 = scmp.ge.s32.totalorder %s18_s25, 6   ;;  %s2912_s13 = sld [smem:[#allocation8_spill]] }
 0x29f   : > { %s2913_s18 = smov %s1904_s19  ;;  %s2914_s19 = smov %s1908_s20 }
 0x2a0   : > { %s2915_s20 = smov %s2040_s11  ;;  %s2916_s21 = smov %s1920_s23 }
 0x2a1   : > { %s2917_s22 = smov %s1924_s24  ;;  %17 = sbr.rel (!%p15_p13) target bundleno = 7 (0x7), region = 97 }
 0x2a3   : > { %s2918_s23 = smov %s2911_s6 }
 0x2a4   : > { %s2919_s24 = smov %s2912_s13 }
 0x2a8   :  { %1482 = vsyncpa [#allocation5], 1 }
 0x2a9   :  { %1484 = vsyncpa [#allocation5 + $0x1], 1 }

</bundles_post_ra>
